<compile_context>
chip_gen: v5e
topology: v5e:2x2
jax: 0.10.0
libtpu: 0.0.40
codegen_flags: <defaults>
</compile_context>

<pallas_src>
import math

import numpy as np

import jax
import jax.numpy as jnp
from jax import lax
from jax.experimental import pallas as pl
from jax.experimental.pallas import tpu as pltpu


# Fixed geometry for the module's natural 16x16 use case.
_H = _W = 16
_HS = _WS = 8                    # super grid (space-to-depth by 2)
_WPAD = _WS + 2                  # padded super-row pitch
_IMG = (_HS + 2) * _WPAD         # padded super positions per image (100)
_MARGIN = 128                    # lane margin: tap slices stay in bounds, stores stay aligned
_EPS = 1e-5

_SUPER9 = [(sdh, sdw) for sdh in (-1, 0, 1) for sdw in (-1, 0, 1)]   # layer-1 super taps
_SUPER4 = [(sdh, sdw) for sdh in (-1, 0) for sdw in (-1, 0)]         # layer-2 super taps


# ----------------------------------------------------------------------------
# Fused whole-model kernel
# ----------------------------------------------------------------------------
def _make_kernel(n_batch):
    PP = n_batch * _IMG              # padded super positions (lanes) for layers 1/2
    P3 = 4 * n_batch                 # layer-3 conv output positions (2x2 per image)
    CNT1 = float(n_batch * _H * _W)          # BN1 sample count (N*16*16)
    CNT2 = float(n_batch * _HS * _WS)        # BN2 sample count (N*8*8)
    CNT3 = float(P3)                          # BN3 sample count (N*2*2)

    def kernel(x_ref, w1_ref, b1_ref, g1_ref, a1_ref,
               w2_ref, b2_ref, g2_ref, a2_ref, mask_ref,
               t_ref, w3_ref, b3_ref, g3_ref, a3_ref,
               p2_ref, w4_ref, b4_ref,
               out_ref, stage_ref, col_ref, tail_ref):
        mask = mask_ref[...]                                     # (1, PP)

        # Only the left margin of the staging buffer is ever read by layer-2
        # taps; zero it once (aligned 128-lane store).  Interior is fully
        # overwritten below; right margin is never read.
        stage_ref[:, 0:_MARGIN] = jnp.zeros((64, _MARGIN), jnp.float32)

        # ---- layer 1: Conv(4->16, s=1, p=1) as s2d super-conv, K = 144 -----
        for k, (sdh, sdw) in enumerate(_SUPER9):
            off = sdh * _WPAD + sdw
            tap = x_ref[:, _MARGIN + off:_MARGIN + off + PP]      # (16, PP) f32
            col_ref[k * 16:(k + 1) * 16, :] = tap.astype(jnp.bfloat16)
        z1 = jnp.dot(w1_ref[...], col_ref[0:144, :],
                     preferred_element_type=jnp.float32) + b1_ref[...]   # (64, PP)

        # BN(16) train mode: the 4 parity rows {j*16 + c} share original
        # channel c.  Two-pass (mean, then centred square) statistics.
        s1 = jnp.sum(z1 * mask, axis=1, keepdims=True)            # (64, 1)
        gmean = (s1[0:16] + s1[16:32] + s1[32:48] + s1[48:64]) * (1.0 / CNT1)
        gsq = jnp.zeros((16, 1), jnp.float32)
        for j in range(4):
            c = (z1[j * 16:(j + 1) * 16, :] - gmean) * mask
            gsq = gsq + jnp.sum(c * c, axis=1, keepdims=True)
        scale1 = lax.rsqrt(gsq * (1.0 / CNT1) + _EPS) * g1_ref[...]      # (16, 1)
        for j in range(4):
            y = ((z1[j * 16:(j + 1) * 16, :] - gmean) * scale1 + a1_ref[...]) * mask
            stage_ref[j * 16:(j + 1) * 16, _MARGIN:_MARGIN + PP] = y
        # nn.LeakyReLU(True): slope == 1.0 -> identity (dropped).

        # ---- layer 2: Conv(16->8, s=2, p=1) as 2x2 super-kernel, K = 256 ---
        for k, (sdh, sdw) in enumerate(_SUPER4):
            off = sdh * _WPAD + sdw
            tap = stage_ref[:, _MARGIN + off:_MARGIN + off + PP]  # (64, PP) f32
            col_ref[k * 64:(k + 1) * 64, :] = tap.astype(jnp.bfloat16)
        z2 = jnp.dot(w2_ref[...], col_ref[...],
                     preferred_element_type=jnp.float32) + b2_ref[...]   # (8, PP)

        # BN(8) train mode.
        m2 = jnp.sum(z2 * mask, axis=1, keepdims=True) * (1.0 / CNT2)
        c2 = (z2 - m2) * mask
        v2 = jnp.sum(c2 * c2, axis=1, keepdims=True) * (1.0 / CNT2)
        y2 = ((z2 - m2) * (lax.rsqrt(v2 + _EPS) * g2_ref[...]) + a2_ref[...]) * mask

        # ---- tail: AvgPool(2) + layer-3 im2col gather in one small matmul --
        tail_ref[...] = jnp.dot(y2, t_ref[...],
                                preferred_element_type=jnp.float32)      # (8, 9*P3)
        z3 = jnp.zeros((4, P3), jnp.float32) + b3_ref[...]
        for k in range(9):
            z3 = z3 + jnp.dot(w3_ref[:, k * 8:(k + 1) * 8],
                              tail_ref[:, k * P3:(k + 1) * P3],
                              preferred_element_type=jnp.float32)        # (4, P3)

        # BN(4) train mode.
        m3 = jnp.sum(z3, axis=1, keepdims=True) * (1.0 / CNT3)
        c3 = z3 - m3
        v3 = jnp.sum(c3 * c3, axis=1, keepdims=True) * (1.0 / CNT3)
        y3 = c3 * (lax.rsqrt(v3 + _EPS) * g3_ref[...]) + a3_ref[...]     # (4, P3)

        # AvgPool(2): 2x2 -> 1x1 per image, then Conv(4->1, p=1) on 1x1
        # spatial = centre tap only.
        pooled = jnp.dot(y3, p2_ref[...], preferred_element_type=jnp.float32)  # (4, N)
        out_ref[...] = jnp.dot(w4_ref[...], pooled,
                               preferred_element_type=jnp.float32) + b4_ref[...]

    return kernel, PP, P3


# ----------------------------------------------------------------------------
# Host-side (wrapper) operand builders — all static, no in-kernel index math
# ----------------------------------------------------------------------------
def _space_to_depth_input(x):
    """(N,4,16,16) NCHW -> (16, N*IMG + 2*MARGIN) padded s2d layout, f32."""
    n = x.shape[0]
    xs = x.astype(jnp.float32).reshape(n, 4, _HS, 2, _WS, 2)
    xs = jnp.transpose(xs, (3, 5, 1, 0, 2, 4)).reshape(16, n, _HS, _WS)
    xs = jnp.pad(xs, ((0, 0), (0, 0), (1, 1), (1, 1)))           # halo ring per image
    xs = xs.reshape(16, n * _IMG)
    return jnp.pad(xs, ((0, 0), (_MARGIN, _MARGIN)))


def _scatter_l1(w1):
    """(3,3,4,16) HWIO -> (64, 144) super-conv weight (rows=(parity,co), cols=(tap,(parity,ci)))."""
    out = jnp.zeros((64, 144), jnp.float32)
    for ph_o in range(2):
        for pw_o in range(2):
            r0 = (ph_o * 2 + pw_o) * 16
            for kh in range(3):
                for kw in range(3):
                    sdh, ph_i = divmod(ph_o + kh - 1, 2)
                    sdw, pw_i = divmod(pw_o + kw - 1, 2)
                    ks = (sdh + 1) * 3 + (sdw + 1)
                    c0 = ks * 16 + (ph_i * 2 + pw_i) * 4
                    out = out.at[r0:r0 + 16, c0:c0 + 4].set(w1[kh, kw].T)
    return out


def _scatter_l2(w2):
    """(3,3,16,8) HWIO -> (8, 256) stride-2-folded 2x2 super-kernel weight."""
    out = jnp.zeros((8, 256), jnp.float32)
    for kh in range(3):
        for kw in range(3):
            sdh, ph = divmod(kh - 1, 2)
            sdw, pw = divmod(kw - 1, 2)
            ks = (sdh + 1) * 2 + (sdw + 1)
            c0 = ks * 64 + (ph * 2 + pw) * 16
            out = out.at[:, c0:c0 + 16].set(w2[kh, kw].T)
    return out


def _flatten_l3(w3):
    """(3,3,8,4) HWIO -> (4, 72), columns ordered (tap, cin)."""
    out = jnp.zeros((4, 72), jnp.float32)
    for kh in range(3):
        for kw in range(3):
            k = kh * 3 + kw
            out = out.at[:, k * 8:(k + 1) * 8].set(w3[kh, kw].T)
    return out


def _valid_mask(n):
    """(1, n*IMG): 1.0 on real super positions, 0.0 on halo."""
    m = np.zeros((n, _HS + 2, _WPAD), np.float32)
    m[:, 1:1 + _HS, 1:1 + _WS] = 1.0
    return jnp.asarray(m.reshape(1, n * _IMG))


def _pool_gather_matrix(n):
    """(n*IMG, 9*4n): AvgPool2d(2) of layer-2 output + layer-3 tap gather (with conv padding)."""
    p3 = 4 * n
    t = np.zeros((n * _IMG, 9 * p3), np.float32)
    for img in range(n):
        for kh in range(3):
            for kw in range(3):
                k = kh * 3 + kw
                for h3 in range(2):
                    for w3 in range(2):
                        hp, wp = 2 * h3 + kh - 1, 2 * w3 + kw - 1
                        if 0 <= hp < 4 and 0 <= wp < 4:
                            col = k * p3 + img * 4 + h3 * 2 + w3
                            for a in range(2):
                                for b in range(2):
                                    r, c = 2 * hp + a, 2 * wp + b
                                    t[img * _IMG + (r + 1) * _WPAD + (c + 1), col] = 0.25
    return jnp.asarray(t)


def _pool2_matrix(n):
    """(4n, n): AvgPool2d(2) of the 2x2 layer-3 output -> 1x1 per image."""
    p = np.zeros((4 * n, n), np.float32)
    for img in range(n):
        p[img * 4:(img + 1) * 4, img] = 0.25
    return jnp.asarray(p)


# ----------------------------------------------------------------------------
# Wrapper
# ----------------------------------------------------------------------------
def discriminator_forward(x_nchw, params):
    n, c, h, w = x_nchw.shape
    assert c == 4 and h == _H and w == _W, "kernel is specialised for (N, 4, 16, 16)"

    kernel, PP, P3 = _make_kernel(n)

    w1, b1, g1, a1 = params["l1"]
    w2, b2, g2, a2 = params["l2"]
    w3, b3, g3, a3 = params["l3"]
    w4, b4 = params["l4"]

    def as_col(v):
        return v.astype(jnp.float32).reshape(-1, 1)

    b1s = jnp.tile(b1.astype(jnp.float32).reshape(1, 16), (4, 1)).reshape(64, 1)

    args = (
        _space_to_depth_input(x_nchw),
        _scatter_l1(w1).astype(jnp.bfloat16),
        b1s, as_col(g1), as_col(a1),
        _scatter_l2(w2).astype(jnp.bfloat16),
        as_col(b2), as_col(g2), as_col(a2),
        _valid_mask(n),
        _pool_gather_matrix(n),
        _flatten_l3(w3),
        as_col(b3), as_col(g3), as_col(a3),
        _pool2_matrix(n),
        w4[1, 1].astype(jnp.float32).reshape(1, 4),
        b4.astype(jnp.float32).reshape(1, 1),
    )

    vmem = pl.BlockSpec(memory_space=pltpu.MemorySpace.VMEM)
    out = pl.pallas_call(
        kernel,
        out_shape=jax.ShapeDtypeStruct((1, n), jnp.float32),
        in_specs=[vmem] * len(args),
        out_specs=vmem,
        scratch_shapes=[
            pltpu.VMEM((64, PP + 2 * _MARGIN), jnp.float32),   # padded layer-1 output staging
            pltpu.VMEM((256, PP), jnp.bfloat16),               # fused-K im2col (bf16 MXU operand)
            pltpu.VMEM((8, 9 * P3), jnp.float32),              # pooled layer-3 taps
        ],
        compiler_params=pltpu.CompilerParams(vmem_limit_bytes=16 * 1024 * 1024),
    )(*args)

    return jnp.transpose(out).reshape(n, 1, 1, 1)


# ----------------------------------------------------------------------------
# Plain-JAX reference (no Pallas) used to validate the kernel in-script
# ----------------------------------------------------------------------------
def _reference_forward(x_nchw, params, *, eps=1e-5):
    def conv(x, wt, b, stride):
        y = lax.conv_general_dilated(
            x, wt, window_strides=(stride, stride), padding=((1, 1), (1, 1)),
            dimension_numbers=("NHWC", "HWIO", "NHWC"),
            precision=lax.Precision.HIGHEST)
        return y + b

    def bn(x, gamma, beta):
        mean = jnp.mean(x, axis=(0, 1, 2), keepdims=True)
        var = jnp.var(x, axis=(0, 1, 2), keepdims=True)   # biased (train mode)
        return (x - mean) * lax.rsqrt(var + eps) * gamma + beta

    def pool(x):
        nb, hh, ww, cc = x.shape
        return x.reshape(nb, hh // 2, 2, ww // 2, 2, cc).mean(axis=(2, 4))

    x = jnp.transpose(x_nchw, (0, 2, 3, 1)).astype(jnp.float32)
    wt, b, g, a = params["l1"]; x = bn(conv(x, wt, b, 1), g, a)
    wt, b, g, a = params["l2"]; x = pool(bn(conv(x, wt, b, 2), g, a))
    wt, b, g, a = params["l3"]; x = pool(bn(conv(x, wt, b, 2), g, a))
    wt, b = params["l4"];       x = conv(x, wt, b, 1)
    # LeakyReLU(negative_slope=True == 1.0) is the identity everywhere.
    return jnp.transpose(x, (0, 3, 1, 2))


# ----------------------------------------------------------------------------
# Deterministic parameter init (shapes follow the PyTorch __init__)
# ----------------------------------------------------------------------------
def _conv_init(key, cin, cout):
    kw_, kb_ = jax.random.split(key)
    bound = 1.0 / math.sqrt(cin * 9)
    wt = jax.random.uniform(kw_, (3, 3, cin, cout), jnp.float32, -bound, bound)
    b = jax.random.uniform(kb_, (cout,), jnp.float32, -bound, bound)
    return wt, b


def _bn_init(key, ch):
    kg, kb_ = jax.random.split(key)
    gamma = 1.0 + 0.05 * jax.random.normal(kg, (ch,), jnp.float32)
    beta = 0.05 * jax.random.normal(kb_, (ch,), jnp.float32)
    return gamma, beta


def init_params(key):
    ks = jax.random.split(key, 7)
    p = {}
    wt, b = _conv_init(ks[0], 4, 16); g, a = _bn_init(ks[1], 16); p["l1"] = (wt, b, g, a)
    wt, b = _conv_init(ks[2], 16, 8); g, a = _bn_init(ks[3], 8);  p["l2"] = (wt, b, g, a)
    wt, b = _conv_init(ks[4], 8, 4);  g, a = _bn_init(ks[5], 4);  p["l3"] = (wt, b, g, a)
    wt, b = _conv_init(ks[6], 4, 1);  p["l4"] = (wt, b)
    return p


if __name__ == "__main__":
    root = jax.random.PRNGKey(0)
    k_x, k_p = jax.random.split(root)

    x = jax.random.normal(k_x, (2, 4, 16, 16), jnp.float32)   # NCHW, like PyTorch
    params = init_params(k_p)

    fwd = jax.jit(lambda inp: discriminator_forward(inp, params))
    y = jax.block_until_ready(fwd(x))

    assert y.shape == (2, 1, 1, 1), y.shape
    assert bool(jnp.all(jnp.isfinite(y)))

    y_ref = jax.block_until_ready(
        jax.jit(lambda inp: _reference_forward(inp, params))(x))
    # bf16 MXU operands in the two big conv matmuls -> small numerical slack.
    assert float(jnp.max(jnp.abs(y - y_ref))) < 3e-2, (y, y_ref)

    print("KERNEL_OK")
</pallas_src>

<mosaic_0001>
module attributes {stable_mosaic.version = 11 : i64} {
  func.func @kernel(%arg0: memref<16x456xf32, #tpu.memory_space<vmem>>, %arg1: memref<64x144xbf16, #tpu.memory_space<vmem>>, %arg2: memref<64x1xf32, #tpu.memory_space<vmem>>, %arg3: memref<16x1xf32, #tpu.memory_space<vmem>>, %arg4: memref<16x1xf32, #tpu.memory_space<vmem>>, %arg5: memref<8x256xbf16, #tpu.memory_space<vmem>>, %arg6: memref<8x1xf32, #tpu.memory_space<vmem>>, %arg7: memref<8x1xf32, #tpu.memory_space<vmem>>, %arg8: memref<8x1xf32, #tpu.memory_space<vmem>>, %arg9: memref<1x200xf32, #tpu.memory_space<vmem>>, %arg10: memref<200x72xf32, #tpu.memory_space<vmem>>, %arg11: memref<4x72xf32, #tpu.memory_space<vmem>>, %arg12: memref<4x1xf32, #tpu.memory_space<vmem>>, %arg13: memref<4x1xf32, #tpu.memory_space<vmem>>, %arg14: memref<4x1xf32, #tpu.memory_space<vmem>>, %arg15: memref<8x2xf32, #tpu.memory_space<vmem>>, %arg16: memref<1x4xf32, #tpu.memory_space<vmem>>, %arg17: memref<1x1xf32, #tpu.memory_space<vmem>>, %arg18: memref<1x2xf32, #tpu.memory_space<vmem>>, %arg19: memref<64x456xf32, #tpu.memory_space<vmem>>, %arg20: memref<256x200xbf16, #tpu.memory_space<vmem>>, %arg21: memref<8x72xf32, #tpu.memory_space<vmem>>) attributes {dimension_semantics = [], scalar_prefetch = 0 : i64, scratch_operands = 3 : i64, tpu.core_type = #tpu.core_type<tc>} {
    %c0 = arith.constant 0 : index
    %c0_0 = arith.constant 0 : index
    %0 = vector.load %arg9[%c0, %c0_0] : memref<1x200xf32, #tpu.memory_space<vmem>>, vector<1x200xf32>
    %cst = arith.constant 0.000000e+00 : f32
    %1 = vector.broadcast %cst : f32 to vector<64x128xf32>
    %c0_1 = arith.constant 0 : index
    %c0_2 = arith.constant 0 : index
    %2 = vector.load %arg19[%c0_1, %c0_2] : memref<64x456xf32, #tpu.memory_space<vmem>>, vector<64x128xf32>
    tpu.vector_store %arg19[%c0_1, %c0_2], %1 {strides = array<i32>} : memref<64x456xf32, #tpu.memory_space<vmem>>, vector<64x128xf32>,
    %c0_3 = arith.constant 0 : index
    %c117 = arith.constant 117 : index
    %3 = vector.load %arg0[%c0_3, %c117] : memref<16x456xf32, #tpu.memory_space<vmem>>, vector<16x200xf32>
    %4 = arith.truncf %3 : vector<16x200xf32> to vector<16x200xbf16>
    %c0_4 = arith.constant 0 : index
    %c0_5 = arith.constant 0 : index
    %5 = vector.load %arg20[%c0_4, %c0_5] : memref<256x200xbf16, #tpu.memory_space<vmem>>, vector<16x200xbf16>
    tpu.vector_store %arg20[%c0_4, %c0_5], %4 {strides = array<i32>} : memref<256x200xbf16, #tpu.memory_space<vmem>>, vector<16x200xbf16>,
    %c0_6 = arith.constant 0 : index
    %c118 = arith.constant 118 : index
    %6 = vector.load %arg0[%c0_6, %c118] : memref<16x456xf32, #tpu.memory_space<vmem>>, vector<16x200xf32>
    %7 = arith.truncf %6 : vector<16x200xf32> to vector<16x200xbf16>
    %c16 = arith.constant 16 : index
    %c0_7 = arith.constant 0 : index
    %8 = vector.load %arg20[%c16, %c0_7] : memref<256x200xbf16, #tpu.memory_space<vmem>>, vector<16x200xbf16>
    tpu.vector_store %arg20[%c16, %c0_7], %7 {strides = array<i32>} : memref<256x200xbf16, #tpu.memory_space<vmem>>, vector<16x200xbf16>,
    %c0_8 = arith.constant 0 : index
    %c119 = arith.constant 119 : index
    %9 = vector.load %arg0[%c0_8, %c119] : memref<16x456xf32, #tpu.memory_space<vmem>>, vector<16x200xf32>
    %10 = arith.truncf %9 : vector<16x200xf32> to vector<16x200xbf16>
    %c32 = arith.constant 32 : index
    %c0_9 = arith.constant 0 : index
    %11 = vector.load %arg20[%c32, %c0_9] : memref<256x200xbf16, #tpu.memory_space<vmem>>, vector<16x200xbf16>
    tpu.vector_store %arg20[%c32, %c0_9], %10 {strides = array<i32>} : memref<256x200xbf16, #tpu.memory_space<vmem>>, vector<16x200xbf16>,
    %c0_10 = arith.constant 0 : index
    %c127 = arith.constant 127 : index
    %12 = vector.load %arg0[%c0_10, %c127] : memref<16x456xf32, #tpu.memory_space<vmem>>, vector<16x200xf32>
    %13 = arith.truncf %12 : vector<16x200xf32> to vector<16x200xbf16>
    %c48 = arith.constant 48 : index
    %c0_11 = arith.constant 0 : index
    %14 = vector.load %arg20[%c48, %c0_11] : memref<256x200xbf16, #tpu.memory_space<vmem>>, vector<16x200xbf16>
    tpu.vector_store %arg20[%c48, %c0_11], %13 {strides = array<i32>} : memref<256x200xbf16, #tpu.memory_space<vmem>>, vector<16x200xbf16>,
    %c0_12 = arith.constant 0 : index
    %c128 = arith.constant 128 : index
    %15 = vector.load %arg0[%c0_12, %c128] : memref<16x456xf32, #tpu.memory_space<vmem>>, vector<16x200xf32>
    %16 = arith.truncf %15 : vector<16x200xf32> to vector<16x200xbf16>
    %c64 = arith.constant 64 : index
    %c0_13 = arith.constant 0 : index
    %17 = vector.load %arg20[%c64, %c0_13] : memref<256x200xbf16, #tpu.memory_space<vmem>>, vector<16x200xbf16>
    tpu.vector_store %arg20[%c64, %c0_13], %16 {strides = array<i32>} : memref<256x200xbf16, #tpu.memory_space<vmem>>, vector<16x200xbf16>,
    %c0_14 = arith.constant 0 : index
    %c129 = arith.constant 129 : index
    %18 = vector.load %arg0[%c0_14, %c129] : memref<16x456xf32, #tpu.memory_space<vmem>>, vector<16x200xf32>
    %19 = arith.truncf %18 : vector<16x200xf32> to vector<16x200xbf16>
    %c80 = arith.constant 80 : index
    %c0_15 = arith.constant 0 : index
    %20 = vector.load %arg20[%c80, %c0_15] : memref<256x200xbf16, #tpu.memory_space<vmem>>, vector<16x200xbf16>
    tpu.vector_store %arg20[%c80, %c0_15], %19 {strides = array<i32>} : memref<256x200xbf16, #tpu.memory_space<vmem>>, vector<16x200xbf16>,
    %c0_16 = arith.constant 0 : index
    %c137 = arith.constant 137 : index
    %21 = vector.load %arg0[%c0_16, %c137] : memref<16x456xf32, #tpu.memory_space<vmem>>, vector<16x200xf32>
    %22 = arith.truncf %21 : vector<16x200xf32> to vector<16x200xbf16>
    %c96 = arith.constant 96 : index
    %c0_17 = arith.constant 0 : index
    %23 = vector.load %arg20[%c96, %c0_17] : memref<256x200xbf16, #tpu.memory_space<vmem>>, vector<16x200xbf16>
    tpu.vector_store %arg20[%c96, %c0_17], %22 {strides = array<i32>} : memref<256x200xbf16, #tpu.memory_space<vmem>>, vector<16x200xbf16>,
    %c0_18 = arith.constant 0 : index
    %c138 = arith.constant 138 : index
    %24 = vector.load %arg0[%c0_18, %c138] : memref<16x456xf32, #tpu.memory_space<vmem>>, vector<16x200xf32>
    %25 = arith.truncf %24 : vector<16x200xf32> to vector<16x200xbf16>
    %c112 = arith.constant 112 : index
    %c0_19 = arith.constant 0 : index
    %26 = vector.load %arg20[%c112, %c0_19] : memref<256x200xbf16, #tpu.memory_space<vmem>>, vector<16x200xbf16>
    tpu.vector_store %arg20[%c112, %c0_19], %25 {strides = array<i32>} : memref<256x200xbf16, #tpu.memory_space<vmem>>, vector<16x200xbf16>,
    %c0_20 = arith.constant 0 : index
    %c139 = arith.constant 139 : index
    %27 = vector.load %arg0[%c0_20, %c139] : memref<16x456xf32, #tpu.memory_space<vmem>>, vector<16x200xf32>
    %28 = arith.truncf %27 : vector<16x200xf32> to vector<16x200xbf16>
    %c128_21 = arith.constant 128 : index
    %c0_22 = arith.constant 0 : index
    %29 = vector.load %arg20[%c128_21, %c0_22] : memref<256x200xbf16, #tpu.memory_space<vmem>>, vector<16x200xbf16>
    tpu.vector_store %arg20[%c128_21, %c0_22], %28 {strides = array<i32>} : memref<256x200xbf16, #tpu.memory_space<vmem>>, vector<16x200xbf16>,
    %c0_23 = arith.constant 0 : index
    %c0_24 = arith.constant 0 : index
    %30 = vector.load %arg1[%c0_23, %c0_24] : memref<64x144xbf16, #tpu.memory_space<vmem>>, vector<64x144xbf16>
    %c0_25 = arith.constant 0 : index
    %c0_26 = arith.constant 0 : index
    %31 = vector.load %arg20[%c0_25, %c0_26] : memref<256x200xbf16, #tpu.memory_space<vmem>>, vector<144x200xbf16>
    %cst_27 = arith.constant dense<0.000000e+00> : vector<64x200xf32>
    %32 = tpu.matmul %30, %31, %cst_27 {dimension_numbers = #tpu.dot_dimension_numbers<[1], [0], [0], [1], [0, 0, 1, 1], [], []>} : vector<64x144xbf16>, vector<144x200xbf16>, vector<64x200xf32> -> vector<64x200xf32>
    %c0_28 = arith.constant 0 : index
    %c0_29 = arith.constant 0 : index
    %33 = vector.load %arg2[%c0_28, %c0_29] : memref<64x1xf32, #tpu.memory_space<vmem>>, vector<64x1xf32>
    %34 = vector.broadcast %33 : vector<64x1xf32> to vector<64x200xf32>
    %35 = arith.addf %32, %34 : vector<64x200xf32>
    %36 = vector.broadcast %0 : vector<1x200xf32> to vector<64x200xf32>
    %37 = arith.mulf %35, %36 : vector<64x200xf32>
    %cst_30 = arith.constant dense<0.000000e+00> : vector<64xf32>
    %38 = vector.multi_reduction <add>, %37, %cst_30 [1] : vector<64x200xf32> to vector<64xf32>
    %39 = vector.shape_cast %38 : vector<64xf32> to vector<64x1xf32>
    %40 = vector.extract_strided_slice %39 {offsets = [0, 0], sizes = [16, 1], strides = [1, 1]} : vector<64x1xf32> to vector<16x1xf32>
    %41 = vector.extract_strided_slice %39 {offsets = [16, 0], sizes = [16, 1], strides = [1, 1]} : vector<64x1xf32> to vector<16x1xf32>
    %42 = arith.addf %40, %41 : vector<16x1xf32>
    %43 = vector.extract_strided_slice %39 {offsets = [32, 0], sizes = [16, 1], strides = [1, 1]} : vector<64x1xf32> to vector<16x1xf32>
    %44 = arith.addf %42, %43 : vector<16x1xf32>
    %45 = vector.extract_strided_slice %39 {offsets = [48, 0], sizes = [16, 1], strides = [1, 1]} : vector<64x1xf32> to vector<16x1xf32>
    %46 = arith.addf %44, %45 : vector<16x1xf32>
    %cst_31 = arith.constant 0.001953125 : f32
    %47 = vector.broadcast %cst_31 : f32 to vector<16x1xf32>
    %48 = arith.mulf %46, %47 : vector<16x1xf32>
    %cst_32 = arith.constant 0.000000e+00 : f32
    %49 = vector.broadcast %cst_32 : f32 to vector<16x1xf32>
    %50 = vector.extract_strided_slice %35 {offsets = [0, 0], sizes = [16, 200], strides = [1, 1]} : vector<64x200xf32> to vector<16x200xf32>
    %51 = vector.broadcast %48 : vector<16x1xf32> to vector<16x200xf32>
    %52 = arith.subf %50, %51 : vector<16x200xf32>
    %53 = vector.broadcast %0 : vector<1x200xf32> to vector<16x200xf32>
    %54 = arith.mulf %52, %53 : vector<16x200xf32>
    %55 = arith.mulf %54, %54 : vector<16x200xf32>
    %cst_33 = arith.constant dense<0.000000e+00> : vector<16xf32>
    %56 = vector.multi_reduction <add>, %55, %cst_33 [1] : vector<16x200xf32> to vector<16xf32>
    %57 = vector.shape_cast %56 : vector<16xf32> to vector<16x1xf32>
    %58 = arith.addf %49, %57 : vector<16x1xf32>
    %59 = vector.extract_strided_slice %35 {offsets = [16, 0], sizes = [16, 200], strides = [1, 1]} : vector<64x200xf32> to vector<16x200xf32>
    %60 = vector.broadcast %48 : vector<16x1xf32> to vector<16x200xf32>
    %61 = arith.subf %59, %60 : vector<16x200xf32>
    %62 = vector.broadcast %0 : vector<1x200xf32> to vector<16x200xf32>
    %63 = arith.mulf %61, %62 : vector<16x200xf32>
    %64 = arith.mulf %63, %63 : vector<16x200xf32>
    %cst_34 = arith.constant dense<0.000000e+00> : vector<16xf32>
    %65 = vector.multi_reduction <add>, %64, %cst_34 [1] : vector<16x200xf32> to vector<16xf32>
    %66 = vector.shape_cast %65 : vector<16xf32> to vector<16x1xf32>
    %67 = arith.addf %58, %66 : vector<16x1xf32>
    %68 = vector.extract_strided_slice %35 {offsets = [32, 0], sizes = [16, 200], strides = [1, 1]} : vector<64x200xf32> to vector<16x200xf32>
    %69 = vector.broadcast %48 : vector<16x1xf32> to vector<16x200xf32>
    %70 = arith.subf %68, %69 : vector<16x200xf32>
    %71 = vector.broadcast %0 : vector<1x200xf32> to vector<16x200xf32>
    %72 = arith.mulf %70, %71 : vector<16x200xf32>
    %73 = arith.mulf %72, %72 : vector<16x200xf32>
    %cst_35 = arith.constant dense<0.000000e+00> : vector<16xf32>
    %74 = vector.multi_reduction <add>, %73, %cst_35 [1] : vector<16x200xf32> to vector<16xf32>
    %75 = vector.shape_cast %74 : vector<16xf32> to vector<16x1xf32>
    %76 = arith.addf %67, %75 : vector<16x1xf32>
    %77 = vector.extract_strided_slice %35 {offsets = [48, 0], sizes = [16, 200], strides = [1, 1]} : vector<64x200xf32> to vector<16x200xf32>
    %78 = vector.broadcast %48 : vector<16x1xf32> to vector<16x200xf32>
    %79 = arith.subf %77, %78 : vector<16x200xf32>
    %80 = vector.broadcast %0 : vector<1x200xf32> to vector<16x200xf32>
    %81 = arith.mulf %79, %80 : vector<16x200xf32>
    %82 = arith.mulf %81, %81 : vector<16x200xf32>
    %cst_36 = arith.constant dense<0.000000e+00> : vector<16xf32>
    %83 = vector.multi_reduction <add>, %82, %cst_36 [1] : vector<16x200xf32> to vector<16xf32>
    %84 = vector.shape_cast %83 : vector<16xf32> to vector<16x1xf32>
    %85 = arith.addf %76, %84 : vector<16x1xf32>
    %cst_37 = arith.constant 0.001953125 : f32
    %86 = vector.broadcast %cst_37 : f32 to vector<16x1xf32>
    %87 = arith.mulf %85, %86 : vector<16x1xf32>
    %cst_38 = arith.constant 9.99999974E-6 : f32
    %88 = vector.broadcast %cst_38 : f32 to vector<16x1xf32>
    %89 = arith.addf %87, %88 : vector<16x1xf32>
    %90 = math.rsqrt %89 : vector<16x1xf32>
    %c0_39 = arith.constant 0 : index
    %c0_40 = arith.constant 0 : index
    %91 = vector.load %arg3[%c0_39, %c0_40] : memref<16x1xf32, #tpu.memory_space<vmem>>, vector<16x1xf32>
    %92 = arith.mulf %90, %91 : vector<16x1xf32>
    %93 = vector.extract_strided_slice %35 {offsets = [0, 0], sizes = [16, 200], strides = [1, 1]} : vector<64x200xf32> to vector<16x200xf32>
    %94 = vector.broadcast %48 : vector<16x1xf32> to vector<16x200xf32>
    %95 = arith.subf %93, %94 : vector<16x200xf32>
    %96 = vector.broadcast %92 : vector<16x1xf32> to vector<16x200xf32>
    %97 = arith.mulf %95, %96 : vector<16x200xf32>
    %c0_41 = arith.constant 0 : index
    %c0_42 = arith.constant 0 : index
    %98 = vector.load %arg4[%c0_41, %c0_42] : memref<16x1xf32, #tpu.memory_space<vmem>>, vector<16x1xf32>
    %99 = vector.broadcast %98 : vector<16x1xf32> to vector<16x200xf32>
    %100 = arith.addf %97, %99 : vector<16x200xf32>
    %101 = vector.broadcast %0 : vector<1x200xf32> to vector<16x200xf32>
    %102 = arith.mulf %100, %101 : vector<16x200xf32>
    %c0_43 = arith.constant 0 : index
    %c128_44 = arith.constant 128 : index
    %103 = vector.load %arg19[%c0_43, %c128_44] : memref<64x456xf32, #tpu.memory_space<vmem>>, vector<16x200xf32>
    tpu.vector_store %arg19[%c0_43, %c128_44], %102 {strides = array<i32>} : memref<64x456xf32, #tpu.memory_space<vmem>>, vector<16x200xf32>,
    %104 = vector.extract_strided_slice %35 {offsets = [16, 0], sizes = [16, 200], strides = [1, 1]} : vector<64x200xf32> to vector<16x200xf32>
    %105 = vector.broadcast %48 : vector<16x1xf32> to vector<16x200xf32>
    %106 = arith.subf %104, %105 : vector<16x200xf32>
    %107 = vector.broadcast %92 : vector<16x1xf32> to vector<16x200xf32>
    %108 = arith.mulf %106, %107 : vector<16x200xf32>
    %c0_45 = arith.constant 0 : index
    %c0_46 = arith.constant 0 : index
    %109 = vector.load %arg4[%c0_45, %c0_46] : memref<16x1xf32, #tpu.memory_space<vmem>>, vector<16x1xf32>
    %110 = vector.broadcast %109 : vector<16x1xf32> to vector<16x200xf32>
    %111 = arith.addf %108, %110 : vector<16x200xf32>
    %112 = vector.broadcast %0 : vector<1x200xf32> to vector<16x200xf32>
    %113 = arith.mulf %111, %112 : vector<16x200xf32>
    %c16_47 = arith.constant 16 : index
    %c128_48 = arith.constant 128 : index
    %114 = vector.load %arg19[%c16_47, %c128_48] : memref<64x456xf32, #tpu.memory_space<vmem>>, vector<16x200xf32>
    tpu.vector_store %arg19[%c16_47, %c128_48], %113 {strides = array<i32>} : memref<64x456xf32, #tpu.memory_space<vmem>>, vector<16x200xf32>,
    %115 = vector.extract_strided_slice %35 {offsets = [32, 0], sizes = [16, 200], strides = [1, 1]} : vector<64x200xf32> to vector<16x200xf32>
    %116 = vector.broadcast %48 : vector<16x1xf32> to vector<16x200xf32>
    %117 = arith.subf %115, %116 : vector<16x200xf32>
    %118 = vector.broadcast %92 : vector<16x1xf32> to vector<16x200xf32>
    %119 = arith.mulf %117, %118 : vector<16x200xf32>
    %c0_49 = arith.constant 0 : index
    %c0_50 = arith.constant 0 : index
    %120 = vector.load %arg4[%c0_49, %c0_50] : memref<16x1xf32, #tpu.memory_space<vmem>>, vector<16x1xf32>
    %121 = vector.broadcast %120 : vector<16x1xf32> to vector<16x200xf32>
    %122 = arith.addf %119, %121 : vector<16x200xf32>
    %123 = vector.broadcast %0 : vector<1x200xf32> to vector<16x200xf32>
    %124 = arith.mulf %122, %123 : vector<16x200xf32>
    %c32_51 = arith.constant 32 : index
    %c128_52 = arith.constant 128 : index
    %125 = vector.load %arg19[%c32_51, %c128_52] : memref<64x456xf32, #tpu.memory_space<vmem>>, vector<16x200xf32>
    tpu.vector_store %arg19[%c32_51, %c128_52], %124 {strides = array<i32>} : memref<64x456xf32, #tpu.memory_space<vmem>>, vector<16x200xf32>,
    %126 = vector.extract_strided_slice %35 {offsets = [48, 0], sizes = [16, 200], strides = [1, 1]} : vector<64x200xf32> to vector<16x200xf32>
    %127 = vector.broadcast %48 : vector<16x1xf32> to vector<16x200xf32>
    %128 = arith.subf %126, %127 : vector<16x200xf32>
    %129 = vector.broadcast %92 : vector<16x1xf32> to vector<16x200xf32>
    %130 = arith.mulf %128, %129 : vector<16x200xf32>
    %c0_53 = arith.constant 0 : index
    %c0_54 = arith.constant 0 : index
    %131 = vector.load %arg4[%c0_53, %c0_54] : memref<16x1xf32, #tpu.memory_space<vmem>>, vector<16x1xf32>
    %132 = vector.broadcast %131 : vector<16x1xf32> to vector<16x200xf32>
    %133 = arith.addf %130, %132 : vector<16x200xf32>
    %134 = vector.broadcast %0 : vector<1x200xf32> to vector<16x200xf32>
    %135 = arith.mulf %133, %134 : vector<16x200xf32>
    %c48_55 = arith.constant 48 : index
    %c128_56 = arith.constant 128 : index
    %136 = vector.load %arg19[%c48_55, %c128_56] : memref<64x456xf32, #tpu.memory_space<vmem>>, vector<16x200xf32>
    tpu.vector_store %arg19[%c48_55, %c128_56], %135 {strides = array<i32>} : memref<64x456xf32, #tpu.memory_space<vmem>>, vector<16x200xf32>,
    %c0_57 = arith.constant 0 : index
    %c117_58 = arith.constant 117 : index
    %137 = vector.load %arg19[%c0_57, %c117_58] : memref<64x456xf32, #tpu.memory_space<vmem>>, vector<64x200xf32>
    %138 = arith.truncf %137 : vector<64x200xf32> to vector<64x200xbf16>
    %c0_59 = arith.constant 0 : index
    %c0_60 = arith.constant 0 : index
    %139 = vector.load %arg20[%c0_59, %c0_60] : memref<256x200xbf16, #tpu.memory_space<vmem>>, vector<64x200xbf16>
    tpu.vector_store %arg20[%c0_59, %c0_60], %138 {strides = array<i32>} : memref<256x200xbf16, #tpu.memory_space<vmem>>, vector<64x200xbf16>,
    %c0_61 = arith.constant 0 : index
    %c118_62 = arith.constant 118 : index
    %140 = vector.load %arg19[%c0_61, %c118_62] : memref<64x456xf32, #tpu.memory_space<vmem>>, vector<64x200xf32>
    %141 = arith.truncf %140 : vector<64x200xf32> to vector<64x200xbf16>
    %c64_63 = arith.constant 64 : index
    %c0_64 = arith.constant 0 : index
    %142 = vector.load %arg20[%c64_63, %c0_64] : memref<256x200xbf16, #tpu.memory_space<vmem>>, vector<64x200xbf16>
    tpu.vector_store %arg20[%c64_63, %c0_64], %141 {strides = array<i32>} : memref<256x200xbf16, #tpu.memory_space<vmem>>, vector<64x200xbf16>,
    %c0_65 = arith.constant 0 : index
    %c127_66 = arith.constant 127 : index
    %143 = vector.load %arg19[%c0_65, %c127_66] : memref<64x456xf32, #tpu.memory_space<vmem>>, vector<64x200xf32>
    %144 = arith.truncf %143 : vector<64x200xf32> to vector<64x200xbf16>
    %c128_67 = arith.constant 128 : index
    %c0_68 = arith.constant 0 : index
    %145 = vector.load %arg20[%c128_67, %c0_68] : memref<256x200xbf16, #tpu.memory_space<vmem>>, vector<64x200xbf16>
    tpu.vector_store %arg20[%c128_67, %c0_68], %144 {strides = array<i32>} : memref<256x200xbf16, #tpu.memory_space<vmem>>, vector<64x200xbf16>,
    %c0_69 = arith.constant 0 : index
    %c128_70 = arith.constant 128 : index
    %146 = vector.load %arg19[%c0_69, %c128_70] : memref<64x456xf32, #tpu.memory_space<vmem>>, vector<64x200xf32>
    %147 = arith.truncf %146 : vector<64x200xf32> to vector<64x200xbf16>
    %c192 = arith.constant 192 : index
    %c0_71 = arith.constant 0 : index
    %148 = vector.load %arg20[%c192, %c0_71] : memref<256x200xbf16, #tpu.memory_space<vmem>>, vector<64x200xbf16>
    tpu.vector_store %arg20[%c192, %c0_71], %147 {strides = array<i32>} : memref<256x200xbf16, #tpu.memory_space<vmem>>, vector<64x200xbf16>,
    %c0_72 = arith.constant 0 : index
    %c0_73 = arith.constant 0 : index
    %149 = vector.load %arg5[%c0_72, %c0_73] : memref<8x256xbf16, #tpu.memory_space<vmem>>, vector<8x256xbf16>
    %c0_74 = arith.constant 0 : index
    %c0_75 = arith.constant 0 : index
    %150 = vector.load %arg20[%c0_74, %c0_75] : memref<256x200xbf16, #tpu.memory_space<vmem>>, vector<256x200xbf16>
    %cst_76 = arith.constant dense<0.000000e+00> : vector<8x200xf32>
    %151 = tpu.matmul %149, %150, %cst_76 {dimension_numbers = #tpu.dot_dimension_numbers<[1], [0], [0], [1], [0, 0, 1, 1], [], []>} : vector<8x256xbf16>, vector<256x200xbf16>, vector<8x200xf32> -> vector<8x200xf32>
    %c0_77 = arith.constant 0 : index
    %c0_78 = arith.constant 0 : index
    %152 = vector.load %arg6[%c0_77, %c0_78] : memref<8x1xf32, #tpu.memory_space<vmem>>, vector<8x1xf32>
    %153 = vector.broadcast %152 : vector<8x1xf32> to vector<8x200xf32>
    %154 = arith.addf %151, %153 : vector<8x200xf32>
    %155 = vector.broadcast %0 : vector<1x200xf32> to vector<8x200xf32>
    %156 = arith.mulf %154, %155 : vector<8x200xf32>
    %cst_79 = arith.constant dense<0.000000e+00> : vector<8xf32>
    %157 = vector.multi_reduction <add>, %156, %cst_79 [1] : vector<8x200xf32> to vector<8xf32>
    %158 = vector.shape_cast %157 : vector<8xf32> to vector<8x1xf32>
    %cst_80 = arith.constant 7.812500e-03 : f32
    %159 = vector.broadcast %cst_80 : f32 to vector<8x1xf32>
    %160 = arith.mulf %158, %159 : vector<8x1xf32>
    %161 = vector.broadcast %160 : vector<8x1xf32> to vector<8x200xf32>
    %162 = arith.subf %154, %161 : vector<8x200xf32>
    %163 = vector.broadcast %0 : vector<1x200xf32> to vector<8x200xf32>
    %164 = arith.mulf %162, %163 : vector<8x200xf32>
    %165 = arith.mulf %164, %164 : vector<8x200xf32>
    %cst_81 = arith.constant dense<0.000000e+00> : vector<8xf32>
    %166 = vector.multi_reduction <add>, %165, %cst_81 [1] : vector<8x200xf32> to vector<8xf32>
    %167 = vector.shape_cast %166 : vector<8xf32> to vector<8x1xf32>
    %cst_82 = arith.constant 7.812500e-03 : f32
    %168 = vector.broadcast %cst_82 : f32 to vector<8x1xf32>
    %169 = arith.mulf %167, %168 : vector<8x1xf32>
    %170 = vector.broadcast %160 : vector<8x1xf32> to vector<8x200xf32>
    %171 = arith.subf %154, %170 : vector<8x200xf32>
    %cst_83 = arith.constant 9.99999974E-6 : f32
    %172 = vector.broadcast %cst_83 : f32 to vector<8x1xf32>
    %173 = arith.addf %169, %172 : vector<8x1xf32>
    %174 = math.rsqrt %173 : vector<8x1xf32>
    %c0_84 = arith.constant 0 : index
    %c0_85 = arith.constant 0 : index
    %175 = vector.load %arg7[%c0_84, %c0_85] : memref<8x1xf32, #tpu.memory_space<vmem>>, vector<8x1xf32>
    %176 = arith.mulf %174, %175 : vector<8x1xf32>
    %177 = vector.broadcast %176 : vector<8x1xf32> to vector<8x200xf32>
    %178 = arith.mulf %171, %177 : vector<8x200xf32>
    %c0_86 = arith.constant 0 : index
    %c0_87 = arith.constant 0 : index
    %179 = vector.load %arg8[%c0_86, %c0_87] : memref<8x1xf32, #tpu.memory_space<vmem>>, vector<8x1xf32>
    %180 = vector.broadcast %179 : vector<8x1xf32> to vector<8x200xf32>
    %181 = arith.addf %178, %180 : vector<8x200xf32>
    %182 = vector.broadcast %0 : vector<1x200xf32> to vector<8x200xf32>
    %183 = arith.mulf %181, %182 : vector<8x200xf32>
    %c0_88 = arith.constant 0 : index
    %c0_89 = arith.constant 0 : index
    %184 = vector.load %arg10[%c0_88, %c0_89] : memref<200x72xf32, #tpu.memory_space<vmem>>, vector<200x72xf32>
    %cst_90 = arith.constant dense<0.000000e+00> : vector<8x72xf32>
    %185 = tpu.matmul %183, %184, %cst_90 {dimension_numbers = #tpu.dot_dimension_numbers<[1], [0], [0], [1], [0, 0, 1, 1], [], []>} : vector<8x200xf32>, vector<200x72xf32>, vector<8x72xf32> -> vector<8x72xf32>
    %c0_91 = arith.constant 0 : index
    %c0_92 = arith.constant 0 : index
    %186 = vector.load %arg21[%c0_91, %c0_92] : memref<8x72xf32, #tpu.memory_space<vmem>>, vector<8x72xf32>
    tpu.vector_store %arg21[%c0_91, %c0_92], %185 {strides = array<i32>} : memref<8x72xf32, #tpu.memory_space<vmem>>, vector<8x72xf32>,
    %cst_93 = arith.constant 0.000000e+00 : f32
    %187 = vector.broadcast %cst_93 : f32 to vector<4x8xf32>
    %c0_94 = arith.constant 0 : index
    %c0_95 = arith.constant 0 : index
    %188 = vector.load %arg12[%c0_94, %c0_95] : memref<4x1xf32, #tpu.memory_space<vmem>>, vector<4x1xf32>
    %189 = vector.broadcast %188 : vector<4x1xf32> to vector<4x8xf32>
    %190 = arith.addf %187, %189 : vector<4x8xf32>
    %c0_96 = arith.constant 0 : index
    %c0_97 = arith.constant 0 : index
    %191 = vector.load %arg11[%c0_96, %c0_97] : memref<4x72xf32, #tpu.memory_space<vmem>>, vector<4x8xf32>
    %c0_98 = arith.constant 0 : index
    %c0_99 = arith.constant 0 : index
    %192 = vector.load %arg21[%c0_98, %c0_99] : memref<8x72xf32, #tpu.memory_space<vmem>>, vector<8x8xf32>
    %cst_100 = arith.constant dense<0.000000e+00> : vector<4x8xf32>
    %193 = tpu.matmul %191, %192, %cst_100 {dimension_numbers = #tpu.dot_dimension_numbers<[1], [0], [0], [1], [0, 0, 1, 1], [], []>} : vector<4x8xf32>, vector<8x8xf32>, vector<4x8xf32> -> vector<4x8xf32>
    %194 = arith.addf %190, %193 : vector<4x8xf32>
    %c0_101 = arith.constant 0 : index
    %c8 = arith.constant 8 : index
    %195 = vector.load %arg11[%c0_101, %c8] : memref<4x72xf32, #tpu.memory_space<vmem>>, vector<4x8xf32>
    %c0_102 = arith.constant 0 : index
    %c8_103 = arith.constant 8 : index
    %196 = vector.load %arg21[%c0_102, %c8_103] : memref<8x72xf32, #tpu.memory_space<vmem>>, vector<8x8xf32>
    %cst_104 = arith.constant dense<0.000000e+00> : vector<4x8xf32>
    %197 = tpu.matmul %195, %196, %cst_104 {dimension_numbers = #tpu.dot_dimension_numbers<[1], [0], [0], [1], [0, 0, 1, 1], [], []>} : vector<4x8xf32>, vector<8x8xf32>, vector<4x8xf32> -> vector<4x8xf32>
    %198 = arith.addf %194, %197 : vector<4x8xf32>
    %c0_105 = arith.constant 0 : index
    %c16_106 = arith.constant 16 : index
    %199 = vector.load %arg11[%c0_105, %c16_106] : memref<4x72xf32, #tpu.memory_space<vmem>>, vector<4x8xf32>
    %c0_107 = arith.constant 0 : index
    %c16_108 = arith.constant 16 : index
    %200 = vector.load %arg21[%c0_107, %c16_108] : memref<8x72xf32, #tpu.memory_space<vmem>>, vector<8x8xf32>
    %cst_109 = arith.constant dense<0.000000e+00> : vector<4x8xf32>
    %201 = tpu.matmul %199, %200, %cst_109 {dimension_numbers = #tpu.dot_dimension_numbers<[1], [0], [0], [1], [0, 0, 1, 1], [], []>} : vector<4x8xf32>, vector<8x8xf32>, vector<4x8xf32> -> vector<4x8xf32>
    %202 = arith.addf %198, %201 : vector<4x8xf32>
    %c0_110 = arith.constant 0 : index
    %c24 = arith.constant 24 : index
    %203 = vector.load %arg11[%c0_110, %c24] : memref<4x72xf32, #tpu.memory_space<vmem>>, vector<4x8xf32>
    %c0_111 = arith.constant 0 : index
    %c24_112 = arith.constant 24 : index
    %204 = vector.load %arg21[%c0_111, %c24_112] : memref<8x72xf32, #tpu.memory_space<vmem>>, vector<8x8xf32>
    %cst_113 = arith.constant dense<0.000000e+00> : vector<4x8xf32>
    %205 = tpu.matmul %203, %204, %cst_113 {dimension_numbers = #tpu.dot_dimension_numbers<[1], [0], [0], [1], [0, 0, 1, 1], [], []>} : vector<4x8xf32>, vector<8x8xf32>, vector<4x8xf32> -> vector<4x8xf32>
    %206 = arith.addf %202, %205 : vector<4x8xf32>
    %c0_114 = arith.constant 0 : index
    %c32_115 = arith.constant 32 : index
    %207 = vector.load %arg11[%c0_114, %c32_115] : memref<4x72xf32, #tpu.memory_space<vmem>>, vector<4x8xf32>
    %c0_116 = arith.constant 0 : index
    %c32_117 = arith.constant 32 : index
    %208 = vector.load %arg21[%c0_116, %c32_117] : memref<8x72xf32, #tpu.memory_space<vmem>>, vector<8x8xf32>
    %cst_118 = arith.constant dense<0.000000e+00> : vector<4x8xf32>
    %209 = tpu.matmul %207, %208, %cst_118 {dimension_numbers = #tpu.dot_dimension_numbers<[1], [0], [0], [1], [0, 0, 1, 1], [], []>} : vector<4x8xf32>, vector<8x8xf32>, vector<4x8xf32> -> vector<4x8xf32>
    %210 = arith.addf %206, %209 : vector<4x8xf32>
    %c0_119 = arith.constant 0 : index
    %c40 = arith.constant 40 : index
    %211 = vector.load %arg11[%c0_119, %c40] : memref<4x72xf32, #tpu.memory_space<vmem>>, vector<4x8xf32>
    %c0_120 = arith.constant 0 : index
    %c40_121 = arith.constant 40 : index
    %212 = vector.load %arg21[%c0_120, %c40_121] : memref<8x72xf32, #tpu.memory_space<vmem>>, vector<8x8xf32>
    %cst_122 = arith.constant dense<0.000000e+00> : vector<4x8xf32>
    %213 = tpu.matmul %211, %212, %cst_122 {dimension_numbers = #tpu.dot_dimension_numbers<[1], [0], [0], [1], [0, 0, 1, 1], [], []>} : vector<4x8xf32>, vector<8x8xf32>, vector<4x8xf32> -> vector<4x8xf32>
    %214 = arith.addf %210, %213 : vector<4x8xf32>
    %c0_123 = arith.constant 0 : index
    %c48_124 = arith.constant 48 : index
    %215 = vector.load %arg11[%c0_123, %c48_124] : memref<4x72xf32, #tpu.memory_space<vmem>>, vector<4x8xf32>
    %c0_125 = arith.constant 0 : index
    %c48_126 = arith.constant 48 : index
    %216 = vector.load %arg21[%c0_125, %c48_126] : memref<8x72xf32, #tpu.memory_space<vmem>>, vector<8x8xf32>
    %cst_127 = arith.constant dense<0.000000e+00> : vector<4x8xf32>
    %217 = tpu.matmul %215, %216, %cst_127 {dimension_numbers = #tpu.dot_dimension_numbers<[1], [0], [0], [1], [0, 0, 1, 1], [], []>} : vector<4x8xf32>, vector<8x8xf32>, vector<4x8xf32> -> vector<4x8xf32>
    %218 = arith.addf %214, %217 : vector<4x8xf32>
    %c0_128 = arith.constant 0 : index
    %c56 = arith.constant 56 : index
    %219 = vector.load %arg11[%c0_128, %c56] : memref<4x72xf32, #tpu.memory_space<vmem>>, vector<4x8xf32>
    %c0_129 = arith.constant 0 : index
    %c56_130 = arith.constant 56 : index
    %220 = vector.load %arg21[%c0_129, %c56_130] : memref<8x72xf32, #tpu.memory_space<vmem>>, vector<8x8xf32>
    %cst_131 = arith.constant dense<0.000000e+00> : vector<4x8xf32>
    %221 = tpu.matmul %219, %220, %cst_131 {dimension_numbers = #tpu.dot_dimension_numbers<[1], [0], [0], [1], [0, 0, 1, 1], [], []>} : vector<4x8xf32>, vector<8x8xf32>, vector<4x8xf32> -> vector<4x8xf32>
    %222 = arith.addf %218, %221 : vector<4x8xf32>
    %c0_132 = arith.constant 0 : index
    %c64_133 = arith.constant 64 : index
    %223 = vector.load %arg11[%c0_132, %c64_133] : memref<4x72xf32, #tpu.memory_space<vmem>>, vector<4x8xf32>
    %c0_134 = arith.constant 0 : index
    %c64_135 = arith.constant 64 : index
    %224 = vector.load %arg21[%c0_134, %c64_135] : memref<8x72xf32, #tpu.memory_space<vmem>>, vector<8x8xf32>
    %cst_136 = arith.constant dense<0.000000e+00> : vector<4x8xf32>
    %225 = tpu.matmul %223, %224, %cst_136 {dimension_numbers = #tpu.dot_dimension_numbers<[1], [0], [0], [1], [0, 0, 1, 1], [], []>} : vector<4x8xf32>, vector<8x8xf32>, vector<4x8xf32> -> vector<4x8xf32>
    %226 = arith.addf %222, %225 : vector<4x8xf32>
    %cst_137 = arith.constant dense<0.000000e+00> : vector<4xf32>
    %227 = vector.multi_reduction <add>, %226, %cst_137 [1] : vector<4x8xf32> to vector<4xf32>
    %228 = vector.shape_cast %227 : vector<4xf32> to vector<4x1xf32>
    %cst_138 = arith.constant 1.250000e-01 : f32
    %229 = vector.broadcast %cst_138 : f32 to vector<4x1xf32>
    %230 = arith.mulf %228, %229 : vector<4x1xf32>
    %231 = vector.broadcast %230 : vector<4x1xf32> to vector<4x8xf32>
    %232 = arith.subf %226, %231 : vector<4x8xf32>
    %233 = arith.mulf %232, %232 : vector<4x8xf32>
    %cst_139 = arith.constant dense<0.000000e+00> : vector<4xf32>
    %234 = vector.multi_reduction <add>, %233, %cst_139 [1] : vector<4x8xf32> to vector<4xf32>
    %235 = vector.shape_cast %234 : vector<4xf32> to vector<4x1xf32>
    %cst_140 = arith.constant 1.250000e-01 : f32
    %236 = vector.broadcast %cst_140 : f32 to vector<4x1xf32>
    %237 = arith.mulf %235, %236 : vector<4x1xf32>
    %cst_141 = arith.constant 9.99999974E-6 : f32
    %238 = vector.broadcast %cst_141 : f32 to vector<4x1xf32>
    %239 = arith.addf %237, %238 : vector<4x1xf32>
    %240 = math.rsqrt %239 : vector<4x1xf32>
    %c0_142 = arith.constant 0 : index
    %c0_143 = arith.constant 0 : index
    %241 = vector.load %arg13[%c0_142, %c0_143] : memref<4x1xf32, #tpu.memory_space<vmem>>, vector<4x1xf32>
    %242 = arith.mulf %240, %241 : vector<4x1xf32>
    %243 = vector.broadcast %242 : vector<4x1xf32> to vector<4x8xf32>
    %244 = arith.mulf %232, %243 : vector<4x8xf32>
    %c0_144 = arith.constant 0 : index
    %c0_145 = arith.constant 0 : index
    %245 = vector.load %arg14[%c0_144, %c0_145] : memref<4x1xf32, #tpu.memory_space<vmem>>, vector<4x1xf32>
    %246 = vector.broadcast %245 : vector<4x1xf32> to vector<4x8xf32>
    %247 = arith.addf %244, %246 : vector<4x8xf32>
    %c0_146 = arith.constant 0 : index
    %c0_147 = arith.constant 0 : index
    %248 = vector.load %arg15[%c0_146, %c0_147] : memref<8x2xf32, #tpu.memory_space<vmem>>, vector<8x2xf32>
    %cst_148 = arith.constant dense<0.000000e+00> : vector<4x2xf32>
    %249 = tpu.matmul %247, %248, %cst_148 {dimension_numbers = #tpu.dot_dimension_numbers<[1], [0], [0], [1], [0, 0, 1, 1], [], []>} : vector<4x8xf32>, vector<8x2xf32>, vector<4x2xf32> -> vector<4x2xf32>
    %c0_149 = arith.constant 0 : index
    %c0_150 = arith.constant 0 : index
    %250 = vector.load %arg16[%c0_149, %c0_150] : memref<1x4xf32, #tpu.memory_space<vmem>>, vector<1x4xf32>
    %cst_151 = arith.constant dense<0.000000e+00> : vector<1x2xf32>
    %251 = tpu.matmul %250, %249, %cst_151 {dimension_numbers = #tpu.dot_dimension_numbers<[1], [0], [0], [1], [0, 0, 1, 1], [], []>} : vector<1x4xf32>, vector<4x2xf32>, vector<1x2xf32> -> vector<1x2xf32>
    %c0_152 = arith.constant 0 : index
    %c0_153 = arith.constant 0 : index
    %252 = vector.load %arg17[%c0_152, %c0_153] : memref<1x1xf32, #tpu.memory_space<vmem>>, vector<1x1xf32>
    %253 = vector.broadcast %252 : vector<1x1xf32> to vector<1x2xf32>
    %254 = arith.addf %251, %253 : vector<1x2xf32>
    %c0_154 = arith.constant 0 : index
    %c0_155 = arith.constant 0 : index
    %255 = vector.load %arg18[%c0_154, %c0_155] : memref<1x2xf32, #tpu.memory_space<vmem>>, vector<1x2xf32>
    tpu.vector_store %arg18[%c0_154, %c0_155], %254 {strides = array<i32>} : memref<1x2xf32, #tpu.memory_space<vmem>>, vector<1x2xf32>,
    return
  }
}

</mosaic_0001>

<bundles_post_ra>
// kernel: tile.6
= control target key start
LH: loop header
LB: loop body
LE: loop exit
PB: predicated region body
PF: predicated region fallthrough
CT: control target
= control target key end

     0   :  { %s22_s0 = inlined_call_operand.vmem [shape: f32[16], index: 0, kind: input, shape index: {}]   ;;  %s23_s1 = inlined_call_operand.vmem [shape: f32[4,1,1,16], index: 1, kind: output, shape index: {}]  }
   0x1   :  { %v4_v0 = vld [vmem:[%s22_s0] ss:$0 sm:$0xff] }
   0x2   :  { %5 = vst [vmem:[%s23_s1] sm:$0xf] %v4_v0 }

// kernel: tile.0
= control target key start
LH: loop header
LB: loop body
LE: loop exit
PB: predicated region body
PF: predicated region fallthrough
CT: control target
= control target key end

     0   :  { %s176_s8 = smov 127   ;;  %s177_s9 = smov 123   ;;  %vm7_vm0 = vcmask 7168   ;;  %s331_s0 = inlined_call_operand.vmem [shape: f32[4,1,1,16], index: 0, kind: input, shape index: {}]   ;;  %s332_s1 = inlined_call_operand.vmem [shape: f32[64,1], index: 1, kind: output, shape index: {}]  }
   0x1   :  { %v4_v0 = vld [vmem:[%s331_s0] sm:$0xf]  ;;  %s175_s0 = smov 125   ;;  %s178_s10 = smov 124  }
   0x2   :  { %5 = vst [vmem:[#allocation0] sm:$0xf] %v4_v0  ;;  %s179_s11 = smov 126   ;;  %s180_s12 = smov 122  }
   0x3   :  { %s181_s13 = smov 120   ;;  %s182_s14 = smov 121  }
   0x4   :  { %s183_s15 = smov 119   ;;  %s184_s16 = smov 117  }
   0x5   :  { %s185_s17 = smov 118   ;;  %s186_s18 = smov 116  }
   0x6   :  { %s187_s19 = smov 114   ;;  %s188_s20 = smov 115  }
   0x7   :  { %s189_s21 = smov 113  }
   0x9   :  { %v26_v1 = vld [vmem:[#allocation0] sm:$0xf]  }
   0xa   :  { %v10_v2 = vld [vmem:[#allocation0] sm:$0xf]   ;;  %27 = vrot.lane.b32.xlu1 %v26_v1, %s175_s0 }
   0xb   :  { %11 = vrot.lane.b32.xlu0 %v10_v2, %s176_s8  ;;  %v42_v3 = vld [vmem:[#allocation0] sm:$0xf]  }
   0xc   :  { %43 = vrot.lane.b32.xlu2 %v42_v3, %s177_s9  ;;  %v34_v4 = vld [vmem:[#allocation0] sm:$0xf]  }
   0xd   :  { %v18_v5 = vld [vmem:[#allocation0] sm:$0xf]  }
   0xe   :  { %v50_v6 = vld [vmem:[#allocation0] sm:$0xf]  }
   0xf   :  { %v66_v7 = vld [vmem:[#allocation0] sm:$0xf]  }
  0x10   :  { %v58_v8 = vld [vmem:[#allocation0] sm:$0xf]  }
  0x11   :  { %v74_v9 = vld [vmem:[#allocation0] sm:$0xf]  }
  0x12   :  { %35 = vrot.lane.b32.xlu1 %v34_v4, %s178_s10  ;;  %v90_v10 = vld [vmem:[#allocation0] sm:$0xf]  }
  0x13   :  { %19 = vrot.lane.b32.xlu0 %v18_v5, %s179_s11  ;;  %v82_v11 = vld [vmem:[#allocation0] sm:$0xf]  }
  0x14   :  { %51 = vrot.lane.b32.xlu2 %v50_v6, %s180_s12  ;;  %v98_v12 = vld [vmem:[#allocation0] sm:$0xf]  }
  0x15   :  { %v114_v13 = vld [vmem:[#allocation0] sm:$0xf]  }
  0x16   :  { %v106_v14 = vld [vmem:[#allocation0] sm:$0xf]  }
  0x17   :  { %v122_v15 = vld [vmem:[#allocation0] sm:$0xf]  }
  0x18   :  { %v6_v22 = vld [vmem:[#allocation0] sm:$0xf]  }
  0x19   :  { %8 = vst.msk [vmem:[%s332_s1] ss:$16 sm:$0x3] %vm7_vm0, %v6_v22  }
  0x1a   :  { %67 = vrot.lane.b32.xlu1 %v66_v7, %s181_s13  ;;  %9 = vst.msk [vmem:[%s332_s1] ss:$16 sm:$0xc] %vm7_vm0, %v6_v22  }
  0x1b   :  { %59 = vrot.lane.b32.xlu0 %v58_v8, %s182_s14 }
  0x1c   :  { %75 = vrot.lane.b32.xlu2 %v74_v9, %s183_s15 }
  0x22   :  { %91 = vrot.lane.b32.xlu1 %v90_v10, %s184_s16 }
  0x23   :  { %83 = vrot.lane.b32.xlu0 %v82_v11, %s185_s17 }
  0x24   :  { %99 = vrot.lane.b32.xlu2 %v98_v12, %s186_s18 }
  0x2a   :  { %115 = vrot.lane.b32.xlu1 %v114_v13, %s187_s19 }
  0x2b   :  { %107 = vrot.lane.b32.xlu0 %v106_v14, %s188_s20 }
  0x2c   :  { %123 = vrot.lane.b32.xlu2 %v122_v15, %s189_s21 }
  0x66   :  { %v44_v16 = vpop.permute.xlu2 %43  }
  0x67   :  { %138 = vst.msk [vmem:[%s332_s1 + $0x5] ss:$16 sm:$0x3] %vm7_vm0, %v44_v16  }
  0x68   :  { %139 = vst.msk [vmem:[%s332_s1 + $0x5] ss:$16 sm:$0xc] %vm7_vm0, %v44_v16  }
  0x6e   :  { %v52_v17 = vpop.permute.xlu2 %51  }
  0x6f   :  { %140 = vst.msk [vmem:[%s332_s1 + $0x6] ss:$16 sm:$0x3] %vm7_vm0, %v52_v17  }
  0x70   :  { %141 = vst.msk [vmem:[%s332_s1 + $0x6] ss:$16 sm:$0xc] %vm7_vm0, %v52_v17  }
  0x76   :  { %v76_v18 = vpop.permute.xlu2 %75  }
  0x77   :  { %146 = vst.msk [vmem:[%s332_s1 + $0x9] ss:$16 sm:$0x3] %vm7_vm0, %v76_v18  }
  0x78   :  { %147 = vst.msk [vmem:[%s332_s1 + $0x9] ss:$16 sm:$0xc] %vm7_vm0, %v76_v18  }
  0x7c   :  { %v28_v19 = vpop.permute.xlu1 %27  }
  0x7d   :  { %v12_v20 = vpop.permute.xlu0 %11   ;;  %134 = vst.msk [vmem:[%s332_s1 + $0x3] ss:$16 sm:$0x3] %vm7_vm0, %v28_v19  }
  0x7e   :  { %135 = vst.msk [vmem:[%s332_s1 + $0x3] ss:$16 sm:$0xc] %vm7_vm0, %v28_v19   ;;  %v100_v21 = vpop.permute.xlu2 %99  }
  0x7f   :  { %130 = vst.msk [vmem:[%s332_s1 + $0x1] ss:$16 sm:$0x3] %vm7_vm0, %v12_v20  }
  0x80   :  { %131 = vst.msk [vmem:[%s332_s1 + $0x1] ss:$16 sm:$0xc] %vm7_vm0, %v12_v20  }
  0x81   :  { %152 = vst.msk [vmem:[%s332_s1 + $0xc] ss:$16 sm:$0x3] %vm7_vm0, %v100_v21  }
  0x82   :  { %153 = vst.msk [vmem:[%s332_s1 + $0xc] ss:$16 sm:$0xc] %vm7_vm0, %v100_v21  }
  0x84   :  { %v36_v23 = vpop.permute.xlu1 %35  }
  0x85   :  { %v20_v24 = vpop.permute.xlu0 %19   ;;  %136 = vst.msk [vmem:[%s332_s1 + $0x4] ss:$16 sm:$0x3] %vm7_vm0, %v36_v23  }
  0x86   :  { %137 = vst.msk [vmem:[%s332_s1 + $0x4] ss:$16 sm:$0xc] %vm7_vm0, %v36_v23   ;;  %v124_v25 = vpop.permute.xlu2 %123  }
  0x87   :  { %132 = vst.msk [vmem:[%s332_s1 + $0x2] ss:$16 sm:$0x3] %vm7_vm0, %v20_v24  }
  0x88   :  { %133 = vst.msk [vmem:[%s332_s1 + $0x2] ss:$16 sm:$0xc] %vm7_vm0, %v20_v24  }
  0x89   :  { %158 = vst.msk [vmem:[%s332_s1 + $0xf] ss:$16 sm:$0x3] %vm7_vm0, %v124_v25  }
  0x8a   :  { %159 = vst.msk [vmem:[%s332_s1 + $0xf] ss:$16 sm:$0xc] %vm7_vm0, %v124_v25  }
  0x8c   :  { %v68_v26 = vpop.permute.xlu1 %67  }
  0x8d   :  { %v60_v27 = vpop.permute.xlu0 %59   ;;  %144 = vst.msk [vmem:[%s332_s1 + $0x8] ss:$16 sm:$0x3] %vm7_vm0, %v68_v26  }
  0x8e   :  { %145 = vst.msk [vmem:[%s332_s1 + $0x8] ss:$16 sm:$0xc] %vm7_vm0, %v68_v26  }
  0x8f   :  { %142 = vst.msk [vmem:[%s332_s1 + $0x7] ss:$16 sm:$0x3] %vm7_vm0, %v60_v27  }
  0x90   :  { %143 = vst.msk [vmem:[%s332_s1 + $0x7] ss:$16 sm:$0xc] %vm7_vm0, %v60_v27  }
  0x94   :  { %v92_v28 = vpop.permute.xlu1 %91  }
  0x95   :  { %v84_v29 = vpop.permute.xlu0 %83   ;;  %150 = vst.msk [vmem:[%s332_s1 + $0xb] ss:$16 sm:$0x3] %vm7_vm0, %v92_v28  }
  0x96   :  { %151 = vst.msk [vmem:[%s332_s1 + $0xb] ss:$16 sm:$0xc] %vm7_vm0, %v92_v28  }
  0x97   :  { %148 = vst.msk [vmem:[%s332_s1 + $0xa] ss:$16 sm:$0x3] %vm7_vm0, %v84_v29  }
  0x98   :  { %149 = vst.msk [vmem:[%s332_s1 + $0xa] ss:$16 sm:$0xc] %vm7_vm0, %v84_v29  }
  0x9c   :  { %v116_v30 = vpop.permute.xlu1 %115  }
  0x9d   :  { %v108_v31 = vpop.permute.xlu0 %107   ;;  %156 = vst.msk [vmem:[%s332_s1 + $0xe] ss:$16 sm:$0x3] %vm7_vm0, %v116_v30  }
  0x9e   :  { %157 = vst.msk [vmem:[%s332_s1 + $0xe] ss:$16 sm:$0xc] %vm7_vm0, %v116_v30  }
  0x9f   :  { %154 = vst.msk [vmem:[%s332_s1 + $0xd] ss:$16 sm:$0x3] %vm7_vm0, %v108_v31  }
  0xa0   :  { %155 = vst.msk [vmem:[%s332_s1 + $0xd] ss:$16 sm:$0xc] %vm7_vm0, %v108_v31  }

// kernel: _lambda_.1
= control target key start
LH: loop header
LB: loop body
LE: loop exit
PB: predicated region body
PF: predicated region fallthrough
CT: control target
= control target key end

     0   :  { %s3428_s0 = inlined_call_operand.vmem [shape: f32[16,456], index: 0, kind: input, shape index: {}]   ;;  %s3429_s1 = inlined_call_operand.vmem [shape: bf16[64,144], index: 1, kind: input, shape index: {}]   ;;  %s3430_s2 = inlined_call_operand.vmem [shape: f32[64,1], index: 2, kind: input, shape index: {}]   ;;  %s3431_s3 = inlined_call_operand.vmem [shape: f32[16,1], index: 3, kind: input, shape index: {}]   ;;  %s3432_s4 = inlined_call_operand.vmem [shape: f32[16,1], index: 4, kind: input, shape index: {}]   ;;  %s3433_s5 = inlined_call_operand.vmem [shape: bf16[8,256], index: 5, kind: input, shape index: {}]   ;;  %s3434_s6 = inlined_call_operand.vmem [shape: f32[8,1], index: 6, kind: input, shape index: {}]   ;;  %s3435_s7 = inlined_call_operand.vmem [shape: f32[8,1], index: 7, kind: input, shape index: {}]   ;;  %s3436_s8 = inlined_call_operand.vmem [shape: f32[8,1], index: 8, kind: input, shape index: {}]   ;;  %s3437_s9 = inlined_call_operand.vmem [shape: f32[1,200], index: 9, kind: input, shape index: {}]   ;;  %s3438_s10 = inlined_call_operand.vmem [shape: f32[200,72], index: 10, kind: input, shape index: {}]   ;;  %s3439_s11 = inlined_call_operand.vmem [shape: f32[4,72], index: 11, kind: input, shape index: {}]   ;;  %s3440_s12 = inlined_call_operand.vmem [shape: f32[4,1], index: 12, kind: input, shape index: {}]   ;;  %s3441_s13 = inlined_call_operand.vmem [shape: f32[4,1], index: 13, kind: input, shape index: {}]   ;;  %s3442_s14 = inlined_call_operand.vmem [shape: f32[4,1], index: 14, kind: input, shape index: {}]   ;;  %s3443_s15 = inlined_call_operand.vmem [shape: f32[8,2], index: 15, kind: input, shape index: {}]   ;;  %s3444_s16 = inlined_call_operand.vmem [shape: f32[1,4], index: 16, kind: input, shape index: {}]   ;;  %s3445_s17 = inlined_call_operand.<no memory space> [shape: f32[1,1], index: 17, kind: input, shape index: {}]   ;;  %s3446_s18 = inlined_call_operand.hbm [shape: f32[1,2], index: 18, kind: output, shape index: {}]  }
   0x1   :  { %3450 = sst [smem:[#allocation9_spill]] %s3428_s0  ;;  %v23_v0 = vstv %s3445_s17 }
   0x2   :  { %3451 = sst [smem:[#allocation10_spill]] %s3429_s1  ;;  %24 = vst [vmem:[#allocation5] sm:$0x1] %v23_v0 }
   0x3   :  { %3452 = sst [smem:[#allocation11_spill]] %s3430_s2 }
   0x4   :  { %s3453_s0 = sld [smem:[#allocation9_spill]] }
   0xa   :  { %v266_v1 = vld [vmem:[%s3453_s0 + $0x8] sm:$0xff]  ;;  %v267_v2 = vld [vmem:[%s3453_s0 + $0x10] sm:$0xff] }
   0xb   :  { %v270_v3 = vpack.c.bf16 %v267_v2, %v266_v1 }
   0xc   :  { %25 = vsyncpa [#allocation7], 0  ;;  %s2492_s20 = smov 118   ;;  %s2493_s21 = smov 119   ;;  %v268_v4 = vld [vmem:[%s3453_s0 + $0x28] sm:$0xff]  ;;  %v269_v5 = vld [vmem:[%s3453_s0 + $0x30] sm:$0xff]  ;;  %v188_v8 = vpack.c.bf16 %v267_v2, %v267_v2 }
   0xd   :  { %274 = vrot.lane.b32.xlu0 %v270_v3, %s2492_s20  ;;  %253 = vrot.lane.b32.xlu1 %v270_v3, %s2493_s21  ;;  %s2494_s24 = smov 127   ;;  %v271_v6 = vpack.c.bf16 %v269_v5, %v268_v4  ;;  %v181_v7 = vld [vmem:[%s3453_s0] sm:$0xff]  ;;  %s2495_s29 = smov 1   ;;  %v190_v12 = vpack.c.bf16 %v269_v5, %v269_v5  ;;  %vm98_vm0 = vcmask 1043456   ;;  %vm107_vm1 = vcmask 588804  }
   0xe   :  { %232 = vrot.lane.b32.xlu2 %v270_v3, %s2494_s24  ;;  %v187_v9 = vpack.c.bf16 %v266_v1, %v181_v7  ;;  %v149_v10 = vld [vmem:[%s3453_s0 + $0x20] sm:$0xff]  ;;  %s2496_s30 = smov 9   ;;  %s2497_s19 = smov 10   ;;  %vm2640_vm2 = vmor %vm107_vm1, %vm98_vm0  ;;  %vm238_vm3 = vcmask 1039360   ;;  %vm280_vm4 = vcmask 965632   ;;  %vm259_vm5 = vcmask 973824  }
   0xf   :  { %v154_v11 = vpack.c.bf16 %v268_v4, %v149_v10  ;;  %s2498_s0 = smov 11   ;;  %s2499_s1 = smov 117   ;;  %222 = vst.msk [vmem:[#allocation3 + $0x40] sm:$0xff] %vm2640_vm2, %v270_v3  ;;  %vm208_vm6 = vcmask 7168   ;;  %vm173_vm7 = vcmask 72704   ;;  %vm301_vm8 = vcmask 957440  }
  0x10   :  { %223 = vst.msk [vmem:[#allocation3 + $0x48] sm:$0xff] %vm2640_vm2, %v271_v6  ;;  %vm138_vm9 = vcmask 80896   ;;  %vm100_vm10 = vcmask 89088   ;;  %s3456_s22 = sld [smem:[#allocation11_spill]]  ;;  %vm508_vm11 = vcmask 130048   ;;  %vm658_vm12 = vcmask 588800  }
  0x11   :  { %s3457_s25 = sld [smem:[#allocation10_spill]]  ;;  %s2502_s27 = smov 120  }
  0x15   :  { %276 = vrot.lane.b32.xlu0 %v271_v6, %s2492_s20  ;;  %255 = vrot.lane.b32.xlu1 %v271_v6, %s2493_s21  ;;  %s2116_s20 = sshll.u32 %s3446_s18, 4  ;;  %s2117_s20 = int_to_ptr.hbm [resolvable:$true] %s2116_s20 }
  0x16   :  { %234 = vrot.lane.b32.xlu2 %v271_v6, %s2494_s24  ;;  %v2191_v1 = vld [vmem:[#allocation3 + $0x40] sm:$0xf]  ;;  %v2394_v5 = vld [vmem:[#allocation3 + $0x44] sm:$0xf] }
  0x17   :  { %v2395_v4 = vld [vmem:[#allocation3 + $0x44] sm:$0xf0] }
  0x1d   :  { %197 = vrot.lane.b32.xlu1 %v188_v8, %s2495_s29  ;;  %195 = vrot.lane.b32.xlu0 %v187_v9, %s2495_s29 }
  0x1e   :  { %199 = vrot.lane.b32.xlu2 %v154_v11, %s2495_s29 }
  0x25   :  { %201 = vrot.lane.b32.xlu0 %v190_v12, %s2495_s29  ;;  %160 = vrot.lane.b32.xlu1 %v187_v9, %s2496_s30 }
  0x26   :  { %162 = vrot.lane.b32.xlu2 %v188_v8, %s2496_s30 }
  0x2d   :  { %164 = vrot.lane.b32.xlu0 %v154_v11, %s2496_s30  ;;  %166 = vrot.lane.b32.xlu1 %v190_v12, %s2496_s30 }
  0x2e   :  { %125 = vrot.lane.b32.xlu2 %v187_v9, %s2497_s19 }
  0x35   :  { %129 = vrot.lane.b32.xlu1 %v154_v11, %s2497_s19  ;;  %127 = vrot.lane.b32.xlu0 %v188_v8, %s2497_s19 }
  0x36   :  { %131 = vrot.lane.b32.xlu2 %v190_v12, %s2497_s19 }
  0x3d   :  { %88 = vrot.lane.b32.xlu1 %v188_v8, %s2498_s0  ;;  %86 = vrot.lane.b32.xlu0 %v187_v9, %s2498_s0 }
  0x3e   :  { %90 = vrot.lane.b32.xlu2 %v154_v11, %s2498_s0  ;;  %v2192_v11 = vor.u32 %v2395_v4, %v2191_v1  ;;  %v335_v1 = vld [vmem:[%s3456_s22 + $0x8] sm:$0xff] }
  0x45   :  { %295 = vrot.lane.b32.xlu1 %v270_v3, %s2499_s1  ;;  %92 = vrot.lane.b32.xlu0 %v190_v12, %s2498_s0 }
  0x46   :  { %297 = vrot.lane.b32.xlu2 %v271_v6, %s2499_s1  ;;  %v2193_v6 = vld [vmem:[#allocation3 + $0x48] sm:$0xf0] }
  0x47   :  { %v2196_v12 = vor.u32 %v2394_v5, %v2193_v6 }
  0x68   :  { %v233_v14 = vpop.permute.xlu2 %232 }
  0x69   :  { %v236_v15 = vrot.slane %v233_v14, 4 }
  0x6b   :  { %v239_v16 = vsel %vm238_vm3, %v233_v14, %v236_v15 }
  0x6c   :  { %243 = vst.msk [vmem:[#allocation3 + $0x50] sm:$0xff] %vm2640_vm2, %v239_v16 }
  0x70   :  { %v235_v17 = vpop.permute.xlu2 %234 }
  0x71   :  { %v237_v18 = vrot.slane %v235_v17, 4 }
  0x73   :  { %v240_v19 = vsel %vm238_vm3, %v235_v17, %v237_v18  ;;  %v2199_v58 = vld [vmem:[#allocation3 + $0x50] sm:$0xf]  ;;  %v2396_v59 = vld [vmem:[#allocation3 + $0x54] sm:$0xf] }
  0x74   :  { %244 = vst.msk [vmem:[#allocation3 + $0x58] sm:$0xff] %vm2640_vm2, %v240_v19 }
  0x78   :  { %v2652_v20 = vpop.permute.xlu2 %199 }
  0x79   :  { %v205_v53 = vrot.slane %v2652_v20, 4 }
  0x7b   :  { %v2397_v62 = vld [vmem:[#allocation3 + $0x54] sm:$0xf0]  ;;  %v2201_v63 = vld [vmem:[#allocation3 + $0x58] sm:$0xf0] }
  0x7c   :  { %v2200_v9 = vor.u32 %v2397_v62, %v2199_v58  ;;  %v2204_v10 = vor.u32 %v2396_v59, %v2201_v63  ;;  %v2500_v62 = vmov 0   ;;  %v334_v63 = vld [vmem:[%s3456_s22] sm:$0xff] }
  0x7d   :  { %2455 = vset.pattern.permute.xlu0 %v2500_v62  ;;  %2456 = vset.pattern.permute.xlu1 %v2500_v62 }
  0x7e   :  { %344 = vperm.xlu0 %2455, %v334_v63   ;;  %349 = vperm.xlu1 %2456, %v335_v1  }
  0x7f   :  { %v275_v21 = vpop.permute.xlu0 %274  ;;  %v254_v22 = vpop.permute.xlu1 %253  ;;  %2457 = vset.pattern.permute.xlu2 %v2500_v62 }
  0x80   :  { %v278_v23 = vrot.slane %v275_v21, 4  ;;  %v257_v24 = vrot.slane %v254_v22, 4  ;;  %v163_v25 = vpop.permute.xlu2 %162 }
  0x81   :  { %v169_v50 = vrot.slane %v163_v25, 4 }
  0x82   :  { %v281_v26 = vsel %vm280_vm4, %v275_v21, %v278_v23  ;;  %v260_v27 = vsel %vm259_vm5, %v254_v22, %v257_v24 }
  0x83   :  { %285 = vst.msk [vmem:[#allocation3 + $0x70] sm:$0xff] %vm2640_vm2, %v281_v26 }
  0x84   :  { %264 = vst.msk [vmem:[#allocation3 + $0x60] sm:$0xff] %vm2640_vm2, %v260_v27 }
  0x87   :  { %v277_v28 = vpop.permute.xlu0 %276  ;;  %v256_v29 = vpop.permute.xlu1 %255 }
  0x88   :  { %v279_v30 = vrot.slane %v277_v28, 4  ;;  %v258_v31 = vrot.slane %v256_v29, 4  ;;  %v2659_v32 = vpop.permute.xlu2 %125 }
  0x8a   :  { %v282_v33 = vsel %vm280_vm4, %v277_v28, %v279_v30  ;;  %v261_v34 = vsel %vm259_vm5, %v256_v29, %v258_v31  ;;  %v2215_v40 = vld [vmem:[#allocation3 + $0x70] sm:$0xf]  ;;  %v2400_v43 = vld [vmem:[#allocation3 + $0x74] sm:$0xf] }
  0x8b   :  { %286 = vst.msk [vmem:[#allocation3 + $0x78] sm:$0xff] %vm2640_vm2, %v282_v33  ;;  %v2207_v51 = vld [vmem:[#allocation3 + $0x60] sm:$0xf]  ;;  %v2398_v52 = vld [vmem:[#allocation3 + $0x64] sm:$0xf]  ;;  %v133_v33 = vrot.slane %v2659_v32, 4 }
  0x8c   :  { %265 = vst.msk [vmem:[#allocation3 + $0x68] sm:$0xff] %vm2640_vm2, %v261_v34 }
  0x8f   :  { %v198_v35 = vpop.permute.xlu1 %197  ;;  %v196_v36 = vpop.permute.xlu0 %195 }
  0x90   :  { %v204_v37 = vrot.slane %v198_v35, 4  ;;  %v203_v38 = vrot.slane %v196_v36, 4  ;;  %v2666_v39 = vpop.permute.xlu2 %131 }
  0x91   :  { %v136_v29 = vrot.slane %v2666_v39, 4 }
  0x92   :  { %v207_v41 = vsel %vm98_vm0, %v203_v38, %v204_v37  ;;  %v2401_v42 = vld [vmem:[#allocation3 + $0x74] sm:$0xf0]  ;;  %v2217_v44 = vld [vmem:[#allocation3 + $0x78] sm:$0xf0] }
  0x93   :  { %v209_v45 = vsel %vm208_vm6, %v196_v36, %v207_v41  ;;  %v2216_v46 = vor.u32 %v2401_v42, %v2215_v40  ;;  %v2220_v47 = vor.u32 %v2400_v43, %v2217_v44  ;;  %v2399_v48 = vld [vmem:[#allocation3 + $0x64] sm:$0xf0]  ;;  %v2209_v49 = vld [vmem:[#allocation3 + $0x68] sm:$0xf0] }
  0x94   :  { %214 = vst.msk [vmem:[#allocation3 + $0x30] sm:$0xff] %vm2640_vm2, %v209_v45  ;;  %v2208_v56 = vor.u32 %v2399_v48, %v2207_v51  ;;  %v2212_v57 = vor.u32 %v2398_v52, %v2209_v49 }
  0x95   :  { %521 = vmatpush.bf16.msra.mxu0 %v2216_v46  ;;  %579 = vmatpush.bf16.msra.mxu2 %v2220_v47 }
  0x97   :  { %v202_v54 = vpop.permute.xlu0 %201  ;;  %v161_v55 = vpop.permute.xlu1 %160 }
  0x98   :  { %v206_v60 = vrot.slane %v202_v54, 4  ;;  %v168_v61 = vrot.slane %v161_v55, 4  ;;  %v2673_v0 = vpop.permute.xlu2 %90 }
  0x99   :  { %522 = vmatpush.bf16.msra.mxu0 %v2208_v56  ;;  %580 = vmatpush.bf16.msra.mxu2 %v2212_v57  ;;  %v96_v59 = vrot.slane %v2673_v0, 4 }
  0x9a   :  { %v210_v2 = vsel %vm98_vm0, %v205_v53, %v206_v60  ;;  %v172_v3 = vsel %vm98_vm0, %v168_v61, %v169_v50 }
  0x9b   :  { %v211_v7 = vsel %vm208_vm6, %v2652_v20, %v210_v2  ;;  %v174_v8 = vsel %vm173_vm7, %v161_v55, %v172_v3  ;;  %v2183_v21 = vld [vmem:[#allocation3 + $0x30] sm:$0xf]  ;;  %v2392_v24 = vld [vmem:[#allocation3 + $0x34] sm:$0xf] }
  0x9c   :  { %215 = vst.msk [vmem:[#allocation3 + $0x38] sm:$0xff] %vm2640_vm2, %v211_v7  ;;  %v2378_v7 = vld [vmem:[%s3457_s25 + $0x4] sm:$0xf] }
  0x9d   :  { %179 = vst.msk [vmem:[#allocation3 + $0x20] sm:$0xff] %vm2640_vm2, %v174_v8  ;;  %523 = vmatpush.bf16.msra.mxu0 %v2200_v9  ;;  %581 = vmatpush.bf16.msra.mxu2 %v2204_v10  ;;  %v2129_v8 = vld [vmem:[%s3457_s25 + $0x8] sm:$0xf0]  ;;  %v2127_v9 = vld [vmem:[%s3457_s25] sm:$0xf] }
  0x9f   :  { %v165_v14 = vpop.permute.xlu0 %164  ;;  %v167_v15 = vpop.permute.xlu1 %166 }
  0xa0   :  { %v170_v16 = vrot.slane %v165_v14, 4  ;;  %v171_v17 = vrot.slane %v167_v15, 4  ;;  %v298_v18 = vpop.permute.xlu2 %297 }
  0xa1   :  { %524 = vmatpush.bf16.msra.mxu0 %v2192_v11  ;;  %582 = vmatpush.bf16.msra.mxu2 %v2196_v12  ;;  %v300_v19 = vrot.slane %v298_v18, 4 }
  0xa2   :  { %v175_v20 = vsel %vm98_vm0, %v170_v16, %v171_v17 }
  0xa3   :  { %v176_v22 = vsel %vm173_vm7, %v165_v14, %v175_v20  ;;  %v2393_v23 = vld [vmem:[#allocation3 + $0x34] sm:$0xf0]  ;;  %v2185_v25 = vld [vmem:[#allocation3 + $0x38] sm:$0xf0]  ;;  %v303_v26 = vsel %vm301_vm8, %v298_v18, %v300_v19  ;;  %vm1761_vm7 = vcmask 64512  }
  0xa4   :  { %180 = vst.msk [vmem:[#allocation3 + $0x28] sm:$0xff] %vm2640_vm2, %v176_v22  ;;  %v2184_v27 = vor.u32 %v2393_v23, %v2183_v21  ;;  %v2188_v28 = vor.u32 %v2392_v24, %v2185_v25  ;;  %v2175_v38 = vld [vmem:[#allocation3 + $0x20] sm:$0xf]  ;;  %v2390_v43 = vld [vmem:[#allocation3 + $0x24] sm:$0xf]  ;;  %v2132_v21 = vor.u32 %v2378_v7, %v2129_v8  ;;  %v337_v23 = vld [vmem:[%s3456_s22 + $0x18] sm:$0xff] }
  0xa5   :  { %307 = vst.msk [vmem:[#allocation3 + $0x88] sm:$0xff] %vm2640_vm2, %v303_v26  ;;  %v339_v24 = vld [vmem:[%s3456_s22 + $0x28] sm:$0xff]  ;;  %v336_v25 = vld [vmem:[%s3456_s22 + $0x10] sm:$0xff]  ;;  %359 = vperm.xlu1 %2456, %v337_v23  }
  0xa6   :  { %525 = vmatpush.bf16.msra.mxu0 %v2184_v27  ;;  %583 = vmatpush.bf16.msra.mxu2 %v2188_v28  ;;  %v340_v26 = vld [vmem:[%s3456_s22 + $0x30] sm:$0xff]  ;;  %v2137_v28 = vld [vmem:[%s3457_s25 + $0x18] sm:$0xf0] }
  0xa7   :  { %v130_v30 = vpop.permute.xlu1 %129  ;;  %v128_v31 = vpop.permute.xlu0 %127  ;;  %369 = vperm.xlu0 %2455, %v339_v24   ;;  %354 = vperm.xlu2 %2457, %v336_v25   ;;  %v2380_v27 = vld [vmem:[%s3457_s25 + $0x14] sm:$0xf] }
  0xa8   :  { %v135_v34 = vrot.slane %v130_v30, 4  ;;  %v134_v35 = vrot.slane %v128_v31, 4  ;;  %v2140_v31 = vor.u32 %v2380_v27, %v2137_v28 }
  0xaa   :  { %v137_v36 = vsel %vm98_vm0, %v133_v33, %v134_v35  ;;  %v140_v37 = vsel %vm98_vm0, %v135_v34, %v136_v29  ;;  %v2135_v29 = vld [vmem:[%s3457_s25 + $0x10] sm:$0xf]  ;;  %v2764_v34 = vld [vmem:[%s3432_s4 + $0x8] sm:$0xff]  ;;  %v338_v35 = vld [vmem:[%s3456_s22 + $0x20] sm:$0xff] }
  0xab   :  { %v139_v40 = vsel %vm138_vm9, %v2659_v32, %v137_v36  ;;  %v141_v41 = vsel %vm138_vm9, %v130_v30, %v140_v37  ;;  %v2391_v42 = vld [vmem:[#allocation3 + $0x24] sm:$0xf0]  ;;  %v2177_v39 = vld [vmem:[#allocation3 + $0x28] sm:$0xf0]  ;;  %v2381_v30 = vld [vmem:[%s3457_s25 + $0x14] sm:$0xf0] }
  0xac   :  { %144 = vst.msk [vmem:[#allocation3 + $0x10] sm:$0xff] %vm2640_vm2, %v139_v40  ;;  %v2176_v44 = vor.u32 %v2391_v42, %v2175_v38  ;;  %v2180_v45 = vor.u32 %v2390_v43, %v2177_v39  ;;  %v2225_v5 = vld [vmem:[#allocation3 + $0x88] sm:$0xf0]  ;;  %v2403_v6 = vld [vmem:[#allocation3 + $0x84] sm:$0xf0]  ;;  %v2136_v33 = vor.u32 %v2381_v30, %v2135_v29  ;;  %v2772_v36 = vld [vmem:[%s3432_s4] sm:$0xff] }
  0xad   :  { %145 = vst.msk [vmem:[#allocation3 + $0x18] sm:$0xff] %vm2640_vm2, %v141_v41  ;;  %374 = vperm.xlu1 %2456, %v340_v26   ;;  %v341_v37 = vld [vmem:[%s3456_s22 + $0x38] sm:$0xff]  ;;  %v2382_v38 = vld [vmem:[%s3457_s25 + $0x24] sm:$0xf]  ;;  %v2145_v40 = vld [vmem:[%s3457_s25 + $0x28] sm:$0xf0] }
  0xae   :  { %526 = vmatpush.bf16.msra.mxu0 %v2176_v44  ;;  %584 = vmatpush.bf16.msra.mxu2 %v2180_v45  ;;  %v2143_v41 = vld [vmem:[%s3457_s25 + $0x20] sm:$0xf]  ;;  %v2383_v42 = vld [vmem:[%s3457_s25 + $0x24] sm:$0xf0]  ;;  %v2148_v43 = vor.u32 %v2382_v38, %v2145_v40  ;;  %v2384_v44 = vld [vmem:[%s3457_s25 + $0x34] sm:$0xf] }
  0xaf   :  { %v89_v46 = vpop.permute.xlu1 %88  ;;  %v87_v47 = vpop.permute.xlu0 %86  ;;  %922 = vperm.xlu0 %2455, %v2764_v34   ;;  %364 = vperm.xlu2 %2457, %v338_v35   ;;  %v2144_v39 = vor.u32 %v2383_v42, %v2143_v41  ;;  %v2153_v45 = vld [vmem:[%s3457_s25 + $0x38] sm:$0xf0]  ;;  %s2508_s4 = smov 64  }
  0xb0   :  { %v95_v48 = vrot.slane %v89_v46, 4  ;;  %v94_v32 = vrot.slane %v87_v47, 4  ;;  %v2151_v46 = vld [vmem:[%s3457_s25 + $0x30] sm:$0xf] }
  0xb2   :  { %v99_v49 = vsel %vm98_vm0, %v94_v32, %v95_v48  ;;  %v2156_v48 = vor.u32 %v2384_v44, %v2153_v45 }
  0xb3   :  { %v101_v50 = vsel %vm100_vm10, %v87_v47, %v99_v49  ;;  %v2167_v51 = vld [vmem:[#allocation3 + $0x10] sm:$0xf]  ;;  %v2388_v52 = vld [vmem:[#allocation3 + $0x14] sm:$0xf]  ;;  %v2385_v47 = vld [vmem:[%s3457_s25 + $0x34] sm:$0xf0] }
  0xb4   :  { %109 = vst.msk [vmem:[#allocation3] sm:$0xff] %vm2640_vm2, %v101_v50  ;;  %v2389_v53 = vld [vmem:[#allocation3 + $0x14] sm:$0xf0]  ;;  %v2169_v54 = vld [vmem:[#allocation3 + $0x18] sm:$0xf0]  ;;  %v2152_v32 = vor.u32 %v2385_v47, %v2151_v46 }
  0xb5   :  { %v2168_v55 = vor.u32 %v2389_v53, %v2167_v51  ;;  %v2172_v56 = vor.u32 %v2388_v52, %v2169_v54  ;;  %889 = vperm.xlu1 %2456, %v2772_v36   ;;  %v63_v53 = vld [vmem:[%s3437_s9] sm:$0x3]  ;;  %s2504_s9 = smov 112  }
  0xb7   :  { %527 = vmatpush.bf16.msra.mxu0 %v2168_v55  ;;  %585 = vmatpush.bf16.msra.mxu2 %v2172_v56  ;;  %v296_v57 = vpop.permute.xlu1 %295  ;;  %v93_v58 = vpop.permute.xlu0 %92 }
  0xb8   :  { %v299_v60 = vrot.slane %v296_v57, 4  ;;  %v97_v61 = vrot.slane %v93_v58, 4  ;;  %894 = vperm.xlu0 %2455, %v2764_v34   ;;  %379 = vperm.xlu2 %2457, %v341_v37  }
  0xba   :  { %v302_v2 = vsel %vm301_vm8, %v296_v57, %v299_v60  ;;  %v102_v3 = vsel %vm98_vm0, %v96_v59, %v97_v61  ;;  %v2815_v57 = vperm.slane %v63_v53, 0  ;;  %v2817_v60 = vperm.slane %v63_v53, 1 }
  0xbb   :  { %306 = vst.msk [vmem:[#allocation3 + $0x80] sm:$0xff] %vm2640_vm2, %v302_v2  ;;  %v103_v4 = vsel %vm100_vm10, %v2673_v0, %v102_v3  ;;  %v2379_v0 = vld [vmem:[%s3457_s25 + $0x4] sm:$0xf0]  ;;  %v2159_v11 = vld [vmem:[#allocation3] sm:$0xf]  ;;  %s2507_s25 = smov 96  }
  0xbc   :  { %110 = vst.msk [vmem:[#allocation3 + $0x8] sm:$0xff] %vm2640_vm2, %v103_v4  ;;  %v2386_v17 = vld [vmem:[#allocation3 + $0x4] sm:$0xf]  ;;  %v2128_v22 = vor.u32 %v2379_v0, %v2127_v9  ;;  %vm2011_vm8 = vcmask 60416  }
  0xc0   :  { %917 = vperm.xlu2 %2457, %v2772_v36  }
  0xc2   :  { %v2402_v10 = vld [vmem:[#allocation3 + $0x84] sm:$0xf]  ;;  %v2223_v12 = vld [vmem:[#allocation3 + $0x80] sm:$0xf] }
  0xc3   :  { %v2228_v14 = vor.u32 %v2402_v10, %v2225_v5  ;;  %v2387_v15 = vld [vmem:[#allocation3 + $0x4] sm:$0xf0]  ;;  %v2224_v16 = vor.u32 %v2403_v6, %v2223_v12  ;;  %v2161_v18 = vld [vmem:[#allocation3 + $0x8] sm:$0xf0] }
  0xc4   :  { %v2160_v19 = vor.u32 %v2387_v15, %v2159_v11  ;;  %v2164_v20 = vor.u32 %v2386_v17, %v2161_v18 }
  0xc5   :  { %615 = vmatpush.bf16.msra.mxu3 %v2228_v14  ;;  %557 = vmatpush.bf16.msra.mxu1 %v2224_v16 }
  0xc6   :  { %528 = vmatpush.bf16.msra.mxu0 %v2160_v19  ;;  %586 = vmatpush.bf16.msra.mxu2 %v2164_v20 }
  0xc8   :  { %2233 = vmatmul.msk.bf16.vlgmr.msra.gmra.mxu3 %vm508_vm11, %v2132_v21  ;;  %2229 = vmatmul.msk.bf16.vlgmr.msra.gmra.mxu1 %vm508_vm11, %v2132_v21 }
  0xc9   :  { %529 = vmatmul.bf16.vlgmr.msra.gmra.mxu0 %v2128_v22  ;;  %587 = vmatmul.bf16.vlgmr.msra.gmra.mxu2 %v2128_v22 }
  0xca   :  { %861 = vperm.xlu2 %2457, %v2772_v36  }
  0xd8   :  { %2234 = vmatmul.msk.bf16.gmra.mxu3 %vm508_vm11, %v2140_v31  ;;  %2230 = vmatmul.msk.bf16.gmra.mxu1 %vm508_vm11, %v2140_v31 }
  0xd9   :  { %534 = vmatmul.bf16.gmra.mxu0 %v2136_v33  ;;  %592 = vmatmul.bf16.gmra.mxu2 %v2136_v33 }
  0xe8   :  { %2235 = vmatmul.msk.bf16.gmra.mxu3 %vm508_vm11, %v2148_v43  ;;  %2231 = vmatmul.msk.bf16.gmra.mxu1 %vm508_vm11, %v2148_v43 }
  0xe9   :  { %539 = vmatmul.bf16.gmra.mxu0 %v2144_v39  ;;  %597 = vmatmul.bf16.gmra.mxu2 %v2144_v39 }
  0xf0   :  { %v345_v50 = vpop.permute.xlu0 %344  ;;  %v350_v63 = vpop.permute.xlu1 %349 }
  0xf8   :  { %2236 = vmatmul.msk.bf16.gmra.mxu3 %vm508_vm11, %v2156_v48  ;;  %2232 = vmatmul.msk.bf16.gmra.mxu1 %vm508_vm11, %v2156_v48 }
  0xf9   :  { %544 = vmatmul.bf16.gmra.mxu0 %v2152_v32  ;;  %602 = vmatmul.bf16.gmra.mxu2 %v2152_v32 }
 0x101   :  { %v355_v11 = vpop.permute.xlu2 %354 }
 0x109   :  { %v365_v42 = vpop.permute.xlu2 %364 }
 0x117   :  { %v360_v27 = vpop.permute.xlu1 %359 }
 0x145   :  { %v559_v49 = vpop.f32.mrf.mxu1 }
 0x146   :  { %v530_v51 = vpop.f32.mrf.mxu0 }
 0x147   :  { %v531_v52 = vadd.f32 %v530_v51, %v345_v50 }
 0x149   :  { %v2813_v56 = vadd.f32 %v559_v49, %v531_v52 }
 0x14b   :  { %v617_v54 = vpop.f32.mrf.mxu3  ;;  %v642_v1 = vmul.f32 %v2815_v57, %v2813_v56 }
 0x14c   :  { %v588_v55 = vpop.f32.mrf.mxu2 }
 0x14d   :  { %v589_v58 = vadd.f32 %v588_v55, %v345_v50  ;;  %v561_v59 = vpop.f32.mrf.mxu1  ;;  %v370_v55 = vpop.permute.xlu0 %369 }
 0x14e   :  { %v532_v61 = vpop.f32.mrf.mxu0 }
 0x14f   :  { %v2819_v62 = vadd.f32 %v617_v54, %v589_v58  ;;  %v533_v3 = vadd.f32 %v532_v61, %v350_v63 }
 0x151   :  { %v643_v2 = vmul.f32 %v2817_v60, %v2819_v62  ;;  %v2826_v0 = vadd.f32 %v561_v59, %v533_v3 }
 0x153   :  { %v619_v4 = vpop.f32.mrf.mxu3  ;;  %v659_v5 = vsel %vm658_vm12, %v643_v2, 0.0  ;;  %v644_v16 = vmul.f32 %v2815_v57, %v2826_v0 }
 0x154   :  { %v590_v6 = vpop.f32.mrf.mxu2  ;;  %v660_v7 = vadd.f32 %v659_v5, %v642_v1 }
 0x155   :  { %v591_v8 = vadd.f32 %v590_v6, %v350_v63  ;;  %v564_v9 = vpop.f32.mrf.mxu1 }
 0x156   :  { %v535_v10 = vpop.f32.mrf.mxu0  ;;  %661 = vadd.xlane.f32.xlu0 %v660_v7  ;;  %v375_v7 = vpop.permute.xlu1 %374 }
 0x157   :  { %v2828_v12 = vadd.f32 %v619_v4, %v591_v8  ;;  %v536_v14 = vadd.f32 %v535_v10, %v355_v11 }
 0x159   :  { %v645_v15 = vmul.f32 %v2817_v60, %v2828_v12  ;;  %v2835_v19 = vadd.f32 %v564_v9, %v536_v14 }
 0x15b   :  { %v622_v17 = vpop.f32.mrf.mxu3  ;;  %v663_v18 = vsel %vm658_vm12, %v645_v15, 0.0  ;;  %v646_v26 = vmul.f32 %v2815_v57, %v2835_v19 }
 0x15c   :  { %v593_v20 = vpop.f32.mrf.mxu2  ;;  %v664_v21 = vadd.f32 %v663_v18, %v644_v16 }
 0x15d   :  { %v594_v22 = vadd.f32 %v593_v20, %v355_v11  ;;  %v566_v23 = vpop.f32.mrf.mxu1 }
 0x15e   :  { %v537_v24 = vpop.f32.mrf.mxu0  ;;  %665 = vadd.xlane.f32.xlu1 %v664_v21 }
 0x15f   :  { %v2837_v25 = vadd.f32 %v622_v17, %v594_v22  ;;  %v538_v29 = vadd.f32 %v537_v24, %v360_v27 }
 0x161   :  { %v647_v28 = vmul.f32 %v2817_v60, %v2837_v25  ;;  %v2844_v40 = vadd.f32 %v566_v23, %v538_v29  ;;  %v380_v23 = vpop.permute.xlu2 %379 }
 0x163   :  { %v624_v30 = vpop.f32.mrf.mxu3  ;;  %v667_v31 = vsel %vm658_vm12, %v647_v28, 0.0  ;;  %v648_v45 = vmul.f32 %v2815_v57, %v2844_v40 }
 0x164   :  { %v595_v33 = vpop.f32.mrf.mxu2  ;;  %v668_v35 = vadd.f32 %v667_v31, %v646_v26 }
 0x165   :  { %v596_v37 = vadd.f32 %v595_v33, %v360_v27  ;;  %v569_v38 = vpop.f32.mrf.mxu1 }
 0x166   :  { %v540_v41 = vpop.f32.mrf.mxu0  ;;  %669 = vadd.xlane.f32.xlu2 %v668_v35 }
 0x167   :  { %v2846_v43 = vadd.f32 %v624_v30, %v596_v37  ;;  %v541_v39 = vadd.f32 %v540_v41, %v365_v42 }
 0x169   :  { %v649_v44 = vmul.f32 %v2817_v60, %v2846_v43  ;;  %v2853_v48 = vadd.f32 %v569_v38, %v541_v39 }
 0x16b   :  { %v627_v46 = vpop.f32.mrf.mxu3  ;;  %v671_v47 = vsel %vm658_vm12, %v649_v44, 0.0  ;;  %v650_v54 = vmul.f32 %v2815_v57, %v2853_v48 }
 0x16c   :  { %v598_v32 = vpop.f32.mrf.mxu2  ;;  %v672_v49 = vadd.f32 %v671_v47, %v648_v45  ;;  %v2886_v45 = vpop.permute.xlu2 %917 }
 0x16d   :  { %v599_v50 = vadd.f32 %v598_v32, %v365_v42  ;;  %v571_v53 = vpop.f32.mrf.mxu1 }
 0x16e   :  { %v542_v51 = vpop.f32.mrf.mxu0  ;;  %673 = vadd.xlane.f32.xlu2 %v672_v49 }
 0x16f   :  { %v2855_v52 = vadd.f32 %v627_v46, %v599_v50  ;;  %v543_v59 = vadd.f32 %v542_v51, %v370_v55  ;;  %v2888_v46 = vpop.permute.xlu0 %922  ;;  %v2894_v50 = vpop.permute.xlu1 %889 }
 0x171   :  { %v651_v58 = vmul.f32 %v2817_v60, %v2855_v52  ;;  %v2862_v4 = vadd.f32 %v571_v53, %v543_v59 }
 0x173   :  { %v629_v61 = vpop.f32.mrf.mxu3  ;;  %v675_v63 = vsel %vm658_vm12, %v651_v58, 0.0  ;;  %v652_v10 = vmul.f32 %v2815_v57, %v2862_v4 }
 0x174   :  { %v600_v1 = vpop.f32.mrf.mxu2  ;;  %v676_v2 = vadd.f32 %v675_v63, %v650_v54  ;;  %v2890_v47 = vpop.permute.xlu2 %861 }
 0x175   :  { %v601_v3 = vadd.f32 %v600_v1, %v370_v55  ;;  %v574_v8 = vpop.f32.mrf.mxu1 }
 0x176   :  { %v545_v5 = vpop.f32.mrf.mxu0  ;;  %677 = vadd.xlane.f32.xlu0 %v676_v2 }
 0x177   :  { %v2864_v6 = vadd.f32 %v629_v61, %v601_v3  ;;  %v546_v11 = vadd.f32 %v545_v5, %v375_v7  ;;  %v2892_v32 = vpop.permute.xlu0 %894 }
 0x179   :  { %v653_v9 = vmul.f32 %v2817_v60, %v2864_v6  ;;  %v575_v20 = vadd.f32 %v574_v8, %v546_v11 }
 0x17b   :  { %v679_v14 = vsel %vm658_vm12, %v653_v9, 0.0  ;;  %v632_v15 = vpop.f32.mrf.mxu3  ;;  %v654_v26 = vmul.f32 %v2815_v57, %v575_v20 }
 0x17c   :  { %v603_v16 = vpop.f32.mrf.mxu2  ;;  %v680_v17 = vadd.f32 %v679_v14, %v652_v10 }
 0x17d   :  { %v604_v18 = vadd.f32 %v603_v16, %v375_v7  ;;  %v576_v28 = vpop.f32.mrf.mxu1 }
 0x17e   :  { %681 = vadd.xlane.f32.xlu1 %v680_v17  ;;  %v547_v22 = vpop.f32.mrf.mxu0 }
 0x17f   :  { %v633_v21 = vadd.f32 %v632_v15, %v604_v18  ;;  %v548_v27 = vadd.f32 %v547_v22, %v380_v23 }
 0x181   :  { %v655_v24 = vmul.f32 %v2817_v60, %v633_v21  ;;  %v2874_v35 = vadd.f32 %v576_v28, %v548_v27 }
 0x183   :  { %v683_v29 = vsel %vm658_vm12, %v655_v24, 0.0  ;;  %v634_v37 = vpop.f32.mrf.mxu3  ;;  %v656_v42 = vmul.f32 %v2815_v57, %v2874_v35 }
 0x184   :  { %v605_v30 = vpop.f32.mrf.mxu2  ;;  %v684_v31 = vadd.f32 %v683_v29, %v654_v26 }
 0x185   :  { %v606_v33 = vadd.f32 %v605_v30, %v380_v23 }
 0x186   :  { %685 = vadd.xlane.f32.xlu2 %v684_v31 }
 0x187   :  { %v2876_v38 = vadd.f32 %v634_v37, %v606_v33 }
 0x189   :  { %v657_v41 = vmul.f32 %v2817_v60, %v2876_v38 }
 0x18b   :  { %v687_v39 = vsel %vm658_vm12, %v657_v41, 0.0 }
 0x18c   :  { %v688_v44 = vadd.f32 %v687_v39, %v656_v42 }
 0x18e   :  { %689 = vadd.xlane.f32.xlu0 %v688_v44 }
 0x197   :  { %866 = vperm.xlu1 %2456, %v2764_v34  }
 0x19e   :  { %838 = vperm.xlu2 %2457, %v2764_v34  }
 0x1a2   :  { %833 = vperm.xlu0 %2455, %v2772_v36  }
 0x1c9   :  { %v662_v51 = vpop.xlane.xlu0 %661 }
 0x1d1   :  { %v666_v54 = vpop.xlane.xlu1 %665 }
 0x1d9   :  { %v670_v49 = vpop.xlane.xlu2 %669 }
 0x1da   :  { %v691_v58 = vadd.f32 %v670_v49, %v662_v51 }
 0x1e1   :  { %v674_v53 = vpop.xlane.xlu2 %673 }
 0x1e2   :  { %v692_v63 = vadd.f32 %v674_v53, %v666_v54 }
 0x1e9   :  { %v678_v55 = vpop.xlane.xlu0 %677 }
 0x1ea   :  { %v693_v59 = vadd.f32 %v691_v58, %v678_v55 }
 0x1f1   :  { %v682_v61 = vpop.xlane.xlu1 %681 }
 0x1f2   :  { %v694_v2 = vadd.f32 %v692_v63, %v682_v61 }
 0x1f9   :  { %v686_v34 = vpop.xlane.xlu2 %685 }
 0x1fa   :  { %v695_v36 = vadd.f32 %v693_v59, %v686_v34 }
 0x1fc   :  { %v697_v1 = vmul.f32 0.001953125, %v695_v36 }
 0x1fe   :  { %v2897_v3 = vsub.f32 %v2853_v48, %v697_v1  ;;  %v2900_v5 = vsub.f32 %v2855_v52, %v697_v1  ;;  %v2903_v7 = vsub.f32 %v2835_v19, %v697_v1  ;;  %v2906_v8 = vsub.f32 %v2837_v25, %v697_v1 }
 0x1ff   :  { %v2909_v9 = vsub.f32 %v2813_v56, %v697_v1  ;;  %v2912_v10 = vsub.f32 %v2819_v62, %v697_v1  ;;  %v2914_v11 = vsub.f32 %v575_v20, %v697_v1  ;;  %v2916_v14 = vsub.f32 %v633_v21, %v697_v1 }
 0x200   :  { %v747_v48 = vmul.f32 %v2897_v3, %v2815_v57  ;;  %v748_v19 = vmul.f32 %v2900_v5, %v2817_v60  ;;  %v725_v25 = vmul.f32 %v2903_v7, %v2815_v57  ;;  %v726_v56 = vmul.f32 %v2906_v8, %v2817_v60 }
 0x201   :  { %v690_v52 = vpop.xlane.xlu0 %689  ;;  %v703_v62 = vmul.f32 %v2909_v9, %v2815_v57  ;;  %v704_v15 = vmul.f32 %v2912_v10, %v2817_v60  ;;  %v770_v16 = vmul.f32 %v2916_v14, %v2817_v60  ;;  %v769_v28 = vmul.f32 %v2914_v11, %v2815_v57 }
 0x202   :  { %v696_v17 = vadd.f32 %v694_v2, %v690_v52  ;;  %v751_v18 = vmul.f32 %v747_v48, %v747_v48  ;;  %v752_v20 = vmul.f32 %v748_v19, %v748_v19  ;;  %v729_v21 = vmul.f32 %v725_v25, %v725_v25 }
 0x203   :  { %v730_v22 = vmul.f32 %v726_v56, %v726_v56  ;;  %v707_v23 = vmul.f32 %v703_v62, %v703_v62  ;;  %v708_v24 = vmul.f32 %v704_v15, %v704_v15  ;;  %v774_v33 = vmul.f32 %v770_v16, %v770_v16 }
 0x204   :  { %v698_v26 = vmul.f32 0.001953125, %v696_v17  ;;  %v755_v27 = vsel %vm658_vm12, %v752_v20, 0.0  ;;  %v773_v51 = vmul.f32 %v769_v28, %v769_v28 }
 0x205   :  { %v756_v29 = vadd.f32 %v755_v27, %v751_v18  ;;  %v733_v30 = vsel %vm658_vm12, %v730_v22, 0.0  ;;  %v711_v31 = vsel %vm658_vm12, %v708_v24, 0.0 }
 0x206   :  { %v734_v37 = vadd.f32 %v733_v30, %v729_v21  ;;  %v712_v41 = vadd.f32 %v711_v31, %v707_v23  ;;  %v2938_v42 = vsub.f32 %v2862_v4, %v698_v26  ;;  %v2941_v39 = vsub.f32 %v2864_v6, %v698_v26  ;;  %v2982_v21 = vpop.permute.xlu2 %838 }
 0x207   :  { %757 = vadd.xlane.f32.xlu2 %v756_v29  ;;  %v2944_v44 = vsub.f32 %v2826_v0, %v698_v26  ;;  %v2947_v49 = vsub.f32 %v2828_v12, %v698_v26  ;;  %v2952_v54 = vsub.f32 %v2846_v43, %v698_v26  ;;  %v777_v4 = vsel %vm658_vm12, %v774_v33, 0.0 }
 0x208   :  { %735 = vadd.xlane.f32.xlu0 %v734_v37  ;;  %713 = vadd.xlane.f32.xlu1 %v712_v41  ;;  %v749_v53 = vmul.f32 %v2938_v42, %v2815_v57  ;;  %v750_v6 = vmul.f32 %v2941_v39, %v2817_v60  ;;  %v2962_v58 = vsub.f32 %v2844_v40, %v698_v26 }
 0x209   :  { %v705_v0 = vmul.f32 %v2944_v44, %v2815_v57  ;;  %v706_v12 = vmul.f32 %v2947_v49, %v2817_v60  ;;  %v2965_v59 = vsub.f32 %v2874_v35, %v698_v26  ;;  %v2968_v43 = vsub.f32 %v2876_v38, %v698_v26  ;;  %v2984_v22 = vpop.permute.xlu1 %866 }
 0x20a   :  { %v753_v55 = vmul.f32 %v749_v53, %v749_v53  ;;  %v754_v34 = vmul.f32 %v750_v6, %v750_v6  ;;  %v728_v63 = vmul.f32 %v2952_v54, %v2817_v60  ;;  %v778_v48 = vadd.f32 %v777_v4, %v773_v51 }
 0x20b   :  { %v709_v61 = vmul.f32 %v705_v0, %v705_v0  ;;  %v710_v36 = vmul.f32 %v706_v12, %v706_v12  ;;  %v772_v1 = vmul.f32 %v2968_v43, %v2817_v60  ;;  %v727_v38 = vmul.f32 %v2962_v58, %v2815_v57 }
 0x20c   :  { %v759_v2 = vsel %vm658_vm12, %v754_v34, 0.0  ;;  %v732_v25 = vmul.f32 %v728_v63, %v728_v63  ;;  %v771_v56 = vmul.f32 %v2965_v59, %v2815_v57 }
 0x20d   :  { %v715_v40 = vsel %vm658_vm12, %v710_v36, 0.0  ;;  %v760_v19 = vadd.f32 %v759_v2, %v753_v55  ;;  %v776_v52 = vmul.f32 %v772_v1, %v772_v1  ;;  %v731_v62 = vmul.f32 %v727_v38, %v727_v38 }
 0x20e   :  { %v716_v35 = vadd.f32 %v715_v40, %v709_v61  ;;  %v737_v15 = vsel %vm658_vm12, %v732_v25, 0.0  ;;  %v775_v16 = vmul.f32 %v771_v56, %v771_v56 }
 0x20f   :  { %v781_v17 = vsel %vm658_vm12, %v776_v52, 0.0  ;;  %v738_v18 = vadd.f32 %v737_v15, %v731_v62 }
 0x210   :  { %779 = vadd.xlane.f32.xlu1 %v778_v48  ;;  %761 = vadd.xlane.f32.xlu0 %v760_v19  ;;  %v782_v20 = vadd.f32 %v781_v17, %v775_v16  ;;  %v811_v48 = vld [vmem:[%s3431_s3] sm:$0xff]  ;;  %v812_v16 = vld [vmem:[%s3431_s3 + $0x8] sm:$0xff] }
 0x211   :  { %717 = vadd.xlane.f32.xlu2 %v716_v35 }
 0x214   :  { %v834_v23 = vpop.permute.xlu0 %833 }
 0x218   :  { %739 = vadd.xlane.f32.xlu1 %v738_v18 }
 0x219   :  { %783 = vadd.xlane.f32.xlu2 %v782_v20 }
 0x27a   :  { %v758_v24 = vpop.xlane.xlu2 %757 }
 0x27b   :  { %v714_v26 = vpop.xlane.xlu1 %713  ;;  %v736_v27 = vpop.xlane.xlu0 %735 }
 0x27c   :  { %v741_v28 = vadd.f32 %v736_v27, %v714_v26 }
 0x27e   :  { %v763_v29 = vadd.f32 %v758_v24, %v741_v28 }
 0x283   :  { %v780_v30 = vpop.xlane.xlu1 %779  ;;  %v762_v4 = vpop.xlane.xlu0 %761 }
 0x284   :  { %v785_v31 = vadd.f32 %v780_v30, %v763_v29  ;;  %v718_v33 = vpop.xlane.xlu2 %717 }
 0x286   :  { %v787_v37 = vmul.f32 0.001953125, %v785_v31 }
 0x288   :  { %v789_v41 = vadd.f32 1e-05, %v787_v37 }
 0x28a   :  { %2458 = vrsqrt.f32 %v789_v41  ;;  %vm797_vm14 = vweird.f32 %v789_v41 }
 0x28b   :  { %v740_v51 = vpop.xlane.xlu1 %739 }
 0x28c   :  { %v742_v53 = vadd.f32 %v740_v51, %v718_v33  ;;  %v784_v0 = vpop.xlane.xlu2 %783 }
 0x28e   :  { %v764_v6 = vadd.f32 %v762_v4, %v742_v53  ;;  %v2501_v4 = vmov 0.0  }
 0x290   :  { %v2459_v12 = vpop.eup %2458  ;;  %v786_v55 = vadd.f32 %v784_v0, %v764_v6 }
 0x291   :  { %v792_v34 = vmul.f32 %v2459_v12, %v789_v41  ;;  %vm798_vm13 = vweird.f32 %v2459_v12 }
 0x292   :  { %v788_v61 = vmul.f32 0.001953125, %v786_v55  ;;  %vm799_vm15 = vmor %vm797_vm14, %vm798_vm13  ;;  %vm2107_vm13 = vcmask 8192  }
 0x293   :  { %v793_v36 = vmul.f32 %v2459_v12, %v792_v34 }
 0x294   :  { %v790_v63 = vadd.f32 1e-05, %v788_v61 }
 0x295   :  { %v794_v1 = vmul.f32 0.5, %v793_v36 }
 0x296   :  { %2460 = vrsqrt.f32 %v790_v63  ;;  %vm807_vm3 = vweird.f32 %v790_v63 }
 0x297   :  { %v795_v2 = vsub.f32 1.5, %v794_v1 }
 0x299   :  { %v796_v40 = vmul.f32 %v2459_v12, %v795_v2 }
 0x29b   :  { %v800_v19 = vsel %vm799_vm15, %v2459_v12, %v796_v40 }
 0x29c   :  { %v2461_v35 = vpop.eup %2460  ;;  %v813_v38 = vmul.f32 %v811_v48, %v800_v19 }
 0x29d   :  { %v802_v25 = vmul.f32 %v2461_v35, %v790_v63  ;;  %vm808_vm1 = vweird.f32 %v2461_v35 }
 0x29e   :  { %817 = vperm.xlu0 %2455, %v813_v38   ;;  %vm809_vm4 = vmor %vm807_vm3, %vm808_vm1 }
 0x29f   :  { %v803_v56 = vmul.f32 %v2461_v35, %v802_v25 }
 0x2a1   :  { %v804_v52 = vmul.f32 0.5, %v803_v56 }
 0x2a3   :  { %v805_v62 = vsub.f32 1.5, %v804_v52 }
 0x2a5   :  { %v806_v15 = vmul.f32 %v2461_v35, %v805_v62 }
 0x2a7   :  { %v810_v17 = vsel %vm809_vm4, %v2461_v35, %v806_v15 }
 0x2a8   :  { %v814_v18 = vmul.f32 %v812_v16, %v810_v17 }
 0x2aa   :  { %822 = vperm.xlu1 %2456, %v814_v18  }
 0x310   :  { %v818_v20 = vpop.permute.xlu0 %817 }
 0x311   :  { %v825_v24 = vmul.f32 %v818_v20, %v2909_v9  ;;  %v826_v26 = vmul.f32 %v818_v20, %v2912_v10  ;;  %v853_v27 = vmul.f32 %v818_v20, %v2903_v7  ;;  %v854_v28 = vmul.f32 %v818_v20, %v2906_v8 }
 0x312   :  { %v881_v29 = vmul.f32 %v818_v20, %v2897_v3  ;;  %v882_v30 = vmul.f32 %v818_v20, %v2900_v5  ;;  %v909_v31 = vmul.f32 %v818_v20, %v2914_v11  ;;  %v910_v33 = vmul.f32 %v818_v20, %v2916_v14 }
 0x313   :  { %v841_v37 = vadd.f32 %v834_v23, %v825_v24  ;;  %v842_v41 = vadd.f32 %v834_v23, %v826_v26  ;;  %v869_v51 = vadd.f32 %v2890_v47, %v853_v27  ;;  %v870_v9 = vadd.f32 %v2890_v47, %v854_v28 }
 0x314   :  { %v897_v10 = vadd.f32 %v2894_v50, %v881_v29  ;;  %v898_v7 = vadd.f32 %v2894_v50, %v882_v30  ;;  %v925_v8 = vadd.f32 %v2886_v45, %v909_v31  ;;  %v926_v23 = vadd.f32 %v2886_v45, %v910_v33 }
 0x315   :  { %v3006_v3 = vmul.f32 %v841_v37, %v2815_v57  ;;  %v846_v5 = vmul.f32 %v842_v41, %v2817_v60  ;;  %v3010_v11 = vmul.f32 %v869_v51, %v2815_v57  ;;  %v874_v14 = vmul.f32 %v870_v9, %v2817_v60 }
 0x316   :  { %v929_v47 = vmul.f32 %v925_v8, %v2815_v57  ;;  %v3016_v53 = vmul.f32 %v897_v10, %v2815_v57  ;;  %v902_v50 = vmul.f32 %v898_v7, %v2817_v60  ;;  %v930_v0 = vmul.f32 %v926_v23, %v2817_v60 }
 0x317   :  { %850 = vst.msk [vmem:[#allocation2 + $0x10] sm:$0xff] %vm658_vm12, %v846_v5  ;;  %v3081_v28 = vpack.c.bf16 %v3006_v3, %v2501_v4  ;;  %v1101_v30 = vpack.c.bf16 %v3010_v11, %v2501_v4 }
 0x318   :  { %v3021_v6 = vpack.c.bf16 %v929_v47, %v2501_v4  ;;  %878 = vst.msk [vmem:[#allocation2 + $0x50] sm:$0xff] %vm658_vm12, %v874_v14  ;;  %v1105_v37 = vpack.c.bf16 %v3016_v53, %v2501_v4 }
 0x319   :  { %906 = vst.msk [vmem:[#allocation2 + $0x90] sm:$0xff] %vm658_vm12, %v902_v50 }
 0x31a   :  { %1153 = vrot.lane.b32.xlu1 %v3021_v6, %s2497_s19  ;;  %934 = vst.msk [vmem:[#allocation2 + $0xd0] sm:$0xff] %vm658_vm12, %v930_v0 }
 0x31c   :  { %v823_v45 = vpop.permute.xlu1 %822 }
 0x31d   :  { %v827_v12 = vmul.f32 %v823_v45, %v2944_v44  ;;  %v828_v55 = vmul.f32 %v823_v45, %v2947_v49  ;;  %v855_v34 = vmul.f32 %v823_v45, %v2962_v58  ;;  %v856_v61 = vmul.f32 %v823_v45, %v2952_v54 }
 0x31e   :  { %v883_v36 = vmul.f32 %v823_v45, %v2938_v42  ;;  %v884_v63 = vmul.f32 %v823_v45, %v2941_v39  ;;  %v911_v1 = vmul.f32 %v823_v45, %v2965_v59  ;;  %v912_v2 = vmul.f32 %v823_v45, %v2968_v43  ;;  %v1075_v18 = vld [vmem:[#allocation2 + $0x10] sm:$0xff] }
 0x31f   :  { %v843_v40 = vadd.f32 %v2982_v21, %v827_v12  ;;  %v844_v44 = vadd.f32 %v2982_v21, %v828_v55  ;;  %v871_v49 = vadd.f32 %v2984_v22, %v855_v34  ;;  %v872_v58 = vadd.f32 %v2984_v22, %v856_v61  ;;  %v1081_v19 = vld [vmem:[#allocation2 + $0x50] sm:$0xff] }
 0x320   :  { %v899_v54 = vadd.f32 %v2892_v32, %v883_v36  ;;  %v900_v48 = vadd.f32 %v2892_v32, %v884_v63  ;;  %v927_v43 = vadd.f32 %v2888_v46, %v911_v1  ;;  %v928_v21 = vadd.f32 %v2888_v46, %v912_v2  ;;  %v1087_v22 = vld [vmem:[#allocation2 + $0x90] sm:$0xff] }
 0x321   :  { %v847_v42 = vmul.f32 %v843_v40, %v2815_v57  ;;  %v848_v39 = vmul.f32 %v844_v44, %v2817_v60  ;;  %v875_v59 = vmul.f32 %v871_v49, %v2815_v57  ;;  %v876_v35 = vmul.f32 %v872_v58, %v2817_v60  ;;  %v1093_v62 = vld [vmem:[#allocation2 + $0xd0] sm:$0xff] }
 0x322   :  { %v3050_v38 = vmul.f32 %v899_v54, %v2815_v57  ;;  %v3052_v25 = vpack.c.bf16 %v1081_v19, %v1081_v19  ;;  %v904_v32 = vmul.f32 %v900_v48, %v2817_v60  ;;  %v3056_v56 = vpack.c.bf16 %v1087_v22, %v1087_v22 }
 0x323   :  { %852 = vst.msk [vmem:[#allocation2 + $0x30] sm:$0xff] %vm658_vm12, %v848_v39  ;;  %v3059_v52 = vmul.f32 %v927_v43, %v2815_v57  ;;  %v3064_v46 = vpack.c.bf16 %v875_v59, %v2501_v4  ;;  %v3067_v15 = vpack.c.bf16 %v847_v42, %v2501_v4  ;;  %v932_v16 = vmul.f32 %v928_v21, %v2817_v60 }
 0x324   :  { %1139 = vrot.lane.b32.xlu1 %v3052_v25, %s2497_s19  ;;  %880 = vst.msk [vmem:[#allocation2 + $0x70] sm:$0xff] %vm658_vm12, %v876_v35  ;;  %v1110_v17 = vpack.c.bf16 %v1093_v62, %v1093_v62  ;;  %1147 = vrot.lane.b32.xlu2 %v3056_v56, %s2497_s19  ;;  %v1367_v20 = vpack.c.bf16 %v1093_v62, %v929_v47 }
 0x325   :  { %908 = vst.msk [vmem:[#allocation2 + $0xb0] sm:$0xff] %vm658_vm12, %v904_v32  ;;  %v1365_v24 = vpack.c.bf16 %v1087_v22, %v3016_v53  ;;  %v1363_v26 = vpack.c.bf16 %v1081_v19, %v3010_v11  ;;  %v1361_v27 = vpack.c.bf16 %v1075_v18, %v3006_v3  ;;  %v3120_v8 = vpack.c.bf16 %v1075_v18, %v1075_v18 }
 0x326   :  { %1155 = vrot.lane.b32.xlu0 %v1110_v17, %s2497_s19  ;;  %936 = vst.msk [vmem:[#allocation2 + $0xf0] sm:$0xff] %vm658_vm12, %v932_v16  ;;  %v1410_v16 = vld [vmem:[%s3434_s6] sm:$0xff] }
 0x327   :  { %1375 = vst.msk [vmem:[#allocation3 + $0xf0] sm:$0xff] %vm2640_vm2, %v1367_v20 }
 0x328   :  { %1373 = vst.msk [vmem:[#allocation3 + $0xe0] sm:$0xff] %vm2640_vm2, %v1365_v24 }
 0x329   :  { %1371 = vst.msk [vmem:[#allocation3 + $0xd0] sm:$0xff] %vm2640_vm2, %v1363_v26 }
 0x32a   :  { %v3085_v29 = vld [vmem:[#allocation2 + $0x30] sm:$0xff]  ;;  %1369 = vst.msk [vmem:[#allocation3 + $0xc0] sm:$0xff] %vm2640_vm2, %v1361_v27 }
 0x32b   :  { %v1362_v31 = vpack.c.bf16 %v3085_v29, %v847_v42  ;;  %v3094_v33 = vld [vmem:[#allocation2 + $0x70] sm:$0xff]  ;;  %v1107_v42 = vpack.c.bf16 %v3050_v38, %v2501_v4  ;;  %v1100_v39 = vpack.c.bf16 %v3085_v29, %v3085_v29 }
 0x32c   :  { %1129 = vrot.lane.b32.xlu1 %v3081_v28, %s2497_s19  ;;  %1137 = vrot.lane.b32.xlu2 %v1101_v30, %s2497_s19  ;;  %v1364_v41 = vpack.c.bf16 %v3094_v33, %v875_v59  ;;  %v3104_v51 = vld [vmem:[#allocation2 + $0xb0] sm:$0xff]  ;;  %v1111_v59 = vpack.c.bf16 %v3059_v52, %v2501_v4  ;;  %v1104_v19 = vpack.c.bf16 %v3094_v33, %v3094_v33 }
 0x32d   :  { %1370 = vst.msk [vmem:[#allocation3 + $0xc8] sm:$0xff] %vm2640_vm2, %v1362_v31  ;;  %v1366_v9 = vpack.c.bf16 %v3104_v51, %v3050_v38  ;;  %v1360_v10 = vld [vmem:[#allocation2 + $0xf0] sm:$0xff]  ;;  %v1108_v43 = vpack.c.bf16 %v3104_v51, %v3104_v51 }
 0x32e   :  { %1145 = vrot.lane.b32.xlu0 %v1105_v37, %s2497_s19  ;;  %1372 = vst.msk [vmem:[#allocation3 + $0xd8] sm:$0xff] %vm2640_vm2, %v1364_v41  ;;  %v1368_v7 = vpack.c.bf16 %v1360_v10, %v3059_v52  ;;  %v2359_v3 = vld [vmem:[#allocation3 + $0xf0] sm:$0xf]  ;;  %v2434_v11 = vld [vmem:[#allocation3 + $0xf4] sm:$0xf]  ;;  %v1112_v48 = vpack.c.bf16 %v1360_v10, %v1360_v10 }
 0x32f   :  { %1374 = vst.msk [vmem:[#allocation3 + $0xe8] sm:$0xff] %vm2640_vm2, %v1366_v9  ;;  %v2351_v0 = vld [vmem:[#allocation3 + $0xe0] sm:$0xf]  ;;  %v2432_v45 = vld [vmem:[#allocation3 + $0xe4] sm:$0xf] }
 0x330   :  { %1376 = vst.msk [vmem:[#allocation3 + $0xf8] sm:$0xff] %vm2640_vm2, %v1368_v7  ;;  %v2343_v36 = vld [vmem:[#allocation3 + $0xd0] sm:$0xf]  ;;  %v2430_v63 = vld [vmem:[#allocation3 + $0xd4] sm:$0xf] }
 0x331   :  { %v2428_v49 = vld [vmem:[#allocation3 + $0xc4] sm:$0xf] }
 0x334   :  { %1019 = vrot.lane.b32.xlu1 %v1110_v17, %s2498_s0  ;;  %1291 = vrot.lane.b32.xlu2 %v1110_v17, %s2495_s29  ;;  %v2429_v40 = vld [vmem:[#allocation3 + $0xc4] sm:$0xf0]  ;;  %v2337_v44 = vld [vmem:[#allocation3 + $0xc8] sm:$0xf0] }
 0x335   :  { %v2431_v34 = vld [vmem:[#allocation3 + $0xd4] sm:$0xf0]  ;;  %v2345_v61 = vld [vmem:[#allocation3 + $0xd8] sm:$0xf0]  ;;  %v2340_v54 = vor.u32 %v2428_v49, %v2337_v44 }
 0x336   :  { %1131 = vrot.lane.b32.xlu0 %v3120_v8, %s2497_s19  ;;  %v2433_v53 = vld [vmem:[#allocation3 + $0xe4] sm:$0xf0]  ;;  %v2353_v50 = vld [vmem:[#allocation3 + $0xe8] sm:$0xf0]  ;;  %v2344_v1 = vor.u32 %v2431_v34, %v2343_v36  ;;  %v2348_v2 = vor.u32 %v2430_v63, %v2345_v61 }
 0x337   :  { %v2435_v5 = vld [vmem:[#allocation3 + $0xf4] sm:$0xf0]  ;;  %v2361_v14 = vld [vmem:[#allocation3 + $0xf8] sm:$0xf0]  ;;  %v2352_v12 = vor.u32 %v2433_v53, %v2351_v0  ;;  %v2356_v55 = vor.u32 %v2432_v45, %v2353_v50 }
 0x338   :  { %v2360_v23 = vor.u32 %v2435_v5, %v2359_v3  ;;  %v2364_v47 = vor.u32 %v2434_v11, %v2361_v14 }
 0x33a   :  { %1596 = vmatpush.bf16.msrb.mxu3 %v2360_v23  ;;  %1622 = vmatpush.bf16.msrb.mxu2 %v2364_v47 }
 0x33c   :  { %1281 = vrot.lane.b32.xlu1 %v1105_v37, %s2495_s29  ;;  %1017 = vrot.lane.b32.xlu2 %v3021_v6, %s2498_s0 }
 0x33e   :  { %1289 = vrot.lane.b32.xlu0 %v3021_v6, %s2495_s29  ;;  %1597 = vmatpush.bf16.msrb.mxu3 %v2352_v12  ;;  %v2335_v6 = vld [vmem:[#allocation3 + $0xc0] sm:$0xf] }
 0x33f   :  { %1623 = vmatpush.bf16.msrb.mxu2 %v2356_v55  ;;  %v2336_v58 = vor.u32 %v2429_v40, %v2335_v6 }
 0x342   :  { %1598 = vmatpush.bf16.msrb.mxu3 %v2344_v1 }
 0x343   :  { %1624 = vmatpush.bf16.msrb.mxu2 %v2348_v2 }
 0x344   :  { %1275 = vrot.lane.b32.xlu1 %v3052_v25, %s2495_s29  ;;  %1011 = vrot.lane.b32.xlu2 %v3056_v56, %s2498_s0 }
 0x346   :  { %1283 = vrot.lane.b32.xlu0 %v3056_v56, %s2495_s29  ;;  %1599 = vmatpush.bf16.msrb.mxu3 %v2336_v58 }
 0x347   :  { %1625 = vmatpush.bf16.msrb.mxu2 %v2340_v54 }
 0x34c   :  { %1001 = vrot.lane.b32.xlu1 %v1101_v30, %s2498_s0  ;;  %1273 = vrot.lane.b32.xlu2 %v1101_v30, %s2495_s29 }
 0x34e   :  { %1009 = vrot.lane.b32.xlu0 %v1105_v37, %s2498_s0 }
 0x354   :  { %1159 = vrot.lane.b32.xlu1 %v1112_v48, %s2497_s19  ;;  %1267 = vrot.lane.b32.xlu2 %v3120_v8, %s2495_s29 }
 0x356   :  { %1003 = vrot.lane.b32.xlu0 %v3052_v25, %s2498_s0 }
 0x35c   :  { %1149 = vrot.lane.b32.xlu1 %v1107_v42, %s2497_s19  ;;  %993 = vrot.lane.b32.xlu2 %v3081_v28, %s2498_s0 }
 0x35e   :  { %1265 = vrot.lane.b32.xlu0 %v3081_v28, %s2495_s29 }
 0x364   :  { %1135 = vrot.lane.b32.xlu1 %v1100_v39, %s2497_s19  ;;  %1157 = vrot.lane.b32.xlu2 %v1111_v59, %s2497_s19 }
 0x366   :  { %1151 = vrot.lane.b32.xlu0 %v1108_v43, %s2497_s19 }
 0x36c   :  { %1293 = vrot.lane.b32.xlu1 %v1111_v59, %s2495_s29  ;;  %1143 = vrot.lane.b32.xlu2 %v1104_v19, %s2497_s19 }
 0x36e   :  { %1141 = vrot.lane.b32.xlu0 %v3064_v46, %s2497_s19 }
 0x374   :  { %1287 = vrot.lane.b32.xlu1 %v1108_v43, %s2495_s29  ;;  %1133 = vrot.lane.b32.xlu2 %v3067_v15, %s2497_s19 }
 0x376   :  { %1295 = vrot.lane.b32.xlu0 %v1112_v48, %s2495_s29 }
 0x37c   :  { %1013 = vrot.lane.b32.xlu1 %v1107_v42, %s2498_s0  ;;  %1023 = vrot.lane.b32.xlu2 %v1112_v48, %s2498_s0 }
 0x37e   :  { %1021 = vrot.lane.b32.xlu0 %v1111_v59, %s2498_s0  ;;  %v1148_v4 = vpop.permute.xlu2 %1147 }
 0x37f   :  { %v1170_v29 = vrot.slane %v1148_v4, 4 }
 0x384   :  { %1007 = vrot.lane.b32.xlu1 %v1104_v19, %s2498_s0  ;;  %1285 = vrot.lane.b32.xlu2 %v1107_v42, %s2495_s29 }
 0x386   :  { %1015 = vrot.lane.b32.xlu0 %v1108_v43, %s2498_s0  ;;  %v1138_v35 = vpop.permute.xlu2 %1137 }
 0x387   :  { %v1165_v25 = vrot.slane %v1138_v35, 4 }
 0x38c   :  { %1269 = vrot.lane.b32.xlu1 %v3067_v15, %s2495_s29  ;;  %v1154_v21 = vpop.permute.xlu1 %1153  ;;  %1279 = vrot.lane.b32.xlu2 %v1104_v19, %s2495_s29 }
 0x38d   :  { %v1173_v18 = vrot.slane %v1154_v21, 4 }
 0x38e   :  { %1277 = vrot.lane.b32.xlu0 %v3064_v46, %s2495_s29  ;;  %v1292_v38 = vpop.permute.xlu2 %1291 }
 0x38f   :  { %v1310_v53 = vrot.slane %v1292_v38, 4 }
 0x394   :  { %995 = vrot.lane.b32.xlu1 %v3120_v8, %s2498_s0  ;;  %1005 = vrot.lane.b32.xlu2 %v3064_v46, %s2498_s0 }
 0x396   :  { %v1140_v22 = vpop.permute.xlu1 %1139  ;;  %1271 = vrot.lane.b32.xlu0 %v1100_v39, %s2495_s29  ;;  %v1018_v56 = vpop.permute.xlu2 %1017 }
 0x397   :  { %v1166_v32 = vrot.slane %v1140_v22, 4  ;;  %v1037_v41 = vrot.slane %v1018_v56, 4 }
 0x398   :  { %v1156_v52 = vpop.permute.xlu0 %1155 }
 0x399   :  { %v1181_v62 = vsel %vm98_vm0, %v1165_v25, %v1166_v32  ;;  %v1174_v17 = vrot.slane %v1156_v52, 4 }
 0x39a   :  { %v1182_v20 = vsel %vm138_vm9, %v1138_v35, %v1181_v62 }
 0x39b   :  { %1203 = vst.msk [vmem:[#allocation3 + $0x50] sm:$0xff] %vm2640_vm2, %v1182_v20  ;;  %v1189_v46 = vsel %vm98_vm0, %v1173_v18, %v1174_v17 }
 0x39c   :  { %1413 = vperm.xlu1 %2456, %v1410_v16   ;;  %v1190_v24 = vsel %vm138_vm9, %v1154_v21, %v1189_v46  ;;  %999 = vrot.lane.b32.xlu2 %v1100_v39, %s2498_s0 }
 0x39d   :  { %1207 = vst.msk [vmem:[#allocation3 + $0x70] sm:$0xff] %vm2640_vm2, %v1190_v24 }
 0x39e   :  { %v1130_v26 = vpop.permute.xlu1 %1129  ;;  %997 = vrot.lane.b32.xlu0 %v3067_v15, %s2498_s0  ;;  %v1012_v27 = vpop.permute.xlu2 %1011 }
 0x39f   :  { %v1161_v15 = vrot.slane %v1130_v26, 4  ;;  %v1034_v48 = vrot.slane %v1012_v27, 4 }
 0x3a0   :  { %v1146_v28 = vpop.permute.xlu0 %1145 }
 0x3a1   :  { %v1169_v30 = vrot.slane %v1146_v28, 4 }
 0x3a3   :  { %v1185_v31 = vsel %vm98_vm0, %v1169_v30, %v1170_v29 }
 0x3a4   :  { %v1186_v33 = vsel %vm138_vm9, %v1146_v28, %v1185_v31  ;;  %v2295_v18 = vld [vmem:[#allocation3 + $0x70] sm:$0xf]  ;;  %v2418_v20 = vld [vmem:[#allocation3 + $0x74] sm:$0xf] }
 0x3a5   :  { %1205 = vst.msk [vmem:[#allocation3 + $0x60] sm:$0xff] %vm2640_vm2, %v1186_v33 }
 0x3a6   :  { %v1020_v37 = vpop.permute.xlu1 %1019  ;;  %v1274_v9 = vpop.permute.xlu2 %1273 }
 0x3a7   :  { %v1038_v51 = vrot.slane %v1020_v37, 4  ;;  %v1301_v55 = vrot.slane %v1274_v9, 4 }
 0x3a8   :  { %v1132_v10 = vpop.permute.xlu0 %1131 }
 0x3a9   :  { %v1053_v7 = vsel %vm98_vm0, %v1037_v41, %v1038_v51  ;;  %v1162_v8 = vrot.slane %v1132_v10, 4 }
 0x3aa   :  { %v1054_v3 = vsel %vm100_vm10, %v1018_v56, %v1053_v7 }
 0x3ab   :  { %1071 = vst.msk [vmem:[#allocation3 + $0x30] sm:$0xff] %vm2640_vm2, %v1054_v3  ;;  %v1177_v5 = vsel %vm98_vm0, %v1161_v15, %v1162_v8 }
 0x3ac   :  { %v1178_v11 = vsel %vm138_vm9, %v1130_v26, %v1177_v5 }
 0x3ad   :  { %1201 = vst.msk [vmem:[#allocation3 + $0x40] sm:$0xff] %vm2640_vm2, %v1178_v11 }
 0x3ae   :  { %v1282_v14 = vpop.permute.xlu1 %1281  ;;  %v1268_v23 = vpop.permute.xlu2 %1267 }
 0x3af   :  { %v1305_v2 = vrot.slane %v1282_v14, 4  ;;  %v1298_v46 = vrot.slane %v1268_v23, 4 }
 0x3b0   :  { %v1290_v47 = vpop.permute.xlu0 %1289 }
 0x3b1   :  { %v1309_v50 = vrot.slane %v1290_v47, 4 }
 0x3b3   :  { %v1325_v0 = vsel %vm98_vm0, %v1309_v50, %v1310_v53 }
 0x3b4   :  { %v1326_v45 = vsel %vm208_vm6, %v1290_v47, %v1325_v0  ;;  %v2287_v0 = vld [vmem:[#allocation3 + $0x60] sm:$0xf] }
 0x3b5   :  { %1343 = vst.msk [vmem:[#allocation3 + $0xb0] sm:$0xff] %vm2640_vm2, %v1326_v45 }
 0x3b6   :  { %v1276_v12 = vpop.permute.xlu1 %1275  ;;  %v3215_v61 = vpop.permute.xlu2 %993 }
 0x3b7   :  { %v1302_v34 = vrot.slane %v1276_v12, 4 }
 0x3b8   :  { %v1284_v36 = vpop.permute.xlu0 %1283 }
 0x3b9   :  { %v1317_v63 = vsel %vm98_vm0, %v1301_v55, %v1302_v34  ;;  %v1306_v1 = vrot.slane %v1284_v36, 4  ;;  %v2416_v55 = vld [vmem:[#allocation3 + $0x64] sm:$0xf] }
 0x3ba   :  { %v1318_v40 = vsel %vm208_vm6, %v1274_v9, %v1317_v63 }
 0x3bb   :  { %1339 = vst.msk [vmem:[#allocation3 + $0x90] sm:$0xff] %vm2640_vm2, %v1318_v40  ;;  %v1321_v44 = vsel %vm98_vm0, %v1305_v2, %v1306_v1 }
 0x3bc   :  { %v1322_v6 = vsel %vm208_vm6, %v1282_v14, %v1321_v44 }
 0x3bd   :  { %1341 = vst.msk [vmem:[#allocation3 + $0xa0] sm:$0xff] %vm2640_vm2, %v1322_v6 }
 0x3be   :  { %v1002_v49 = vpop.permute.xlu1 %1001  ;;  %v1158_v58 = vpop.permute.xlu2 %1157 }
 0x3bf   :  { %v1175_v19 = vrot.slane %v1158_v58, 4  ;;  %v1029_v25 = vrot.slane %v1002_v49, 4 }
 0x3c0   :  { %v1010_v54 = vpop.permute.xlu0 %1009 }
 0x3c1   :  { %v1033_v42 = vrot.slane %v1010_v54, 4 }
 0x3c3   :  { %v1049_v39 = vsel %vm98_vm0, %v1033_v42, %v1034_v48 }
 0x3c4   :  { %v1050_v59 = vsel %vm100_vm10, %v1010_v54, %v1049_v39  ;;  %v2279_v39 = vld [vmem:[#allocation3 + $0x50] sm:$0xf] }
 0x3c5   :  { %1069 = vst.msk [vmem:[#allocation3 + $0x20] sm:$0xff] %vm2640_vm2, %v1050_v59 }
 0x3c6   :  { %v1160_v43 = vpop.permute.xlu1 %1159  ;;  %v1144_v35 = vpop.permute.xlu2 %1143 }
 0x3c7   :  { %v1176_v4 = vrot.slane %v1160_v43, 4  ;;  %v1168_v47 = vrot.slane %v1144_v35, 4 }
 0x3c8   :  { %v1004_v21 = vpop.permute.xlu0 %1003 }
 0x3c9   :  { %v1191_v38 = vsel %vm98_vm0, %v1175_v19, %v1176_v4  ;;  %v1030_v22 = vrot.slane %v1004_v21, 4  ;;  %v2414_v19 = vld [vmem:[#allocation3 + $0x54] sm:$0xf] }
 0x3ca   :  { %v1192_v32 = vsel %vm138_vm9, %v1158_v58, %v1191_v38 }
 0x3cb   :  { %1208 = vst.msk [vmem:[#allocation3 + $0x78] sm:$0xff] %vm2640_vm2, %v1192_v32  ;;  %v1045_v56 = vsel %vm98_vm0, %v1029_v25, %v1030_v22 }
 0x3cc   :  { %v1046_v52 = vsel %vm100_vm10, %v1002_v49, %v1045_v56  ;;  %v2271_v56 = vld [vmem:[#allocation3 + $0x40] sm:$0xf] }
 0x3cd   :  { %1067 = vst.msk [vmem:[#allocation3 + $0x10] sm:$0xff] %vm2640_vm2, %v1046_v52  ;;  %v2412_v52 = vld [vmem:[#allocation3 + $0x44] sm:$0xf] }
 0x3ce   :  { %v1150_v62 = vpop.permute.xlu1 %1149  ;;  %v1134_v16 = vpop.permute.xlu2 %1133 }
 0x3cf   :  { %v1163_v37 = vrot.slane %v1134_v16, 4  ;;  %v1171_v8 = vrot.slane %v1150_v62, 4 }
 0x3d0   :  { %v1266_v17 = vpop.permute.xlu0 %1265 }
 0x3d1   :  { %v1297_v24 = vrot.slane %v1266_v17, 4 }
 0x3d2   :  { %v2419_v26 = vld [vmem:[#allocation3 + $0x74] sm:$0xf0]  ;;  %v2297_v27 = vld [vmem:[#allocation3 + $0x78] sm:$0xf0] }
 0x3d3   :  { %v2296_v28 = vor.u32 %v2419_v26, %v2295_v18  ;;  %v2300_v29 = vor.u32 %v2418_v20, %v2297_v27  ;;  %v1313_v30 = vsel %vm98_vm0, %v1297_v24, %v1298_v46  ;;  %v2327_v24 = vld [vmem:[#allocation3 + $0xb0] sm:$0xf] }
 0x3d4   :  { %v1314_v31 = vsel %vm208_vm6, %v1266_v17, %v1313_v30 }
 0x3d5   :  { %1583 = vmatpush.bf16.msrb.mxu1 %v2296_v28  ;;  %1609 = vmatpush.bf16.msrb.mxu0 %v2300_v29  ;;  %1337 = vst.msk [vmem:[#allocation3 + $0x80] sm:$0xff] %vm2640_vm2, %v1314_v31  ;;  %v2426_v28 = vld [vmem:[#allocation3 + $0xb4] sm:$0xf] }
 0x3d6   :  { %v1136_v33 = vpop.permute.xlu1 %1135  ;;  %v1024_v51 = vpop.permute.xlu2 %1023 }
 0x3d7   :  { %v1164_v41 = vrot.slane %v1136_v33, 4 }
 0x3d8   :  { %v1152_v9 = vpop.permute.xlu0 %1151 }
 0x3d9   :  { %v1179_v10 = vsel %vm98_vm0, %v1163_v37, %v1164_v41  ;;  %v1172_v7 = vrot.slane %v1152_v9, 4 }
 0x3da   :  { %v1180_v15 = vsel %vm138_vm9, %v1134_v16, %v1179_v10 }
 0x3db   :  { %1202 = vst.msk [vmem:[#allocation3 + $0x48] sm:$0xff] %vm2640_vm2, %v1180_v15  ;;  %v1187_v3 = vsel %vm98_vm0, %v1171_v8, %v1172_v7  ;;  %v2319_v8 = vld [vmem:[#allocation3 + $0xa0] sm:$0xf]  ;;  %v2424_v15 = vld [vmem:[#allocation3 + $0xa4] sm:$0xf] }
 0x3dc   :  { %v1188_v5 = vsel %vm138_vm9, %v1150_v62, %v1187_v3  ;;  %v1040_v62 = vrot.slane %v1024_v51, 4 }
 0x3dd   :  { %1206 = vst.msk [vmem:[#allocation3 + $0x68] sm:$0xff] %vm2640_vm2, %v1188_v5 }
 0x3de   :  { %v1294_v11 = vpop.permute.xlu1 %1293  ;;  %v1286_v14 = vpop.permute.xlu2 %1285 }
 0x3df   :  { %v1307_v2 = vrot.slane %v1286_v14, 4  ;;  %v1311_v58 = vrot.slane %v1294_v11, 4 }
 0x3e0   :  { %v1142_v23 = vpop.permute.xlu0 %1141 }
 0x3e1   :  { %v1167_v53 = vrot.slane %v1142_v23, 4 }
 0x3e2   :  { %v2413_v22 = vld [vmem:[#allocation3 + $0x44] sm:$0xf0]  ;;  %v2273_v25 = vld [vmem:[#allocation3 + $0x48] sm:$0xf0] }
 0x3e3   :  { %v1183_v50 = vsel %vm98_vm0, %v1167_v53, %v1168_v47  ;;  %v2272_v17 = vor.u32 %v2413_v22, %v2271_v56  ;;  %v2276_v18 = vor.u32 %v2412_v52, %v2273_v25  ;;  %v2263_v53 = vld [vmem:[#allocation3 + $0x30] sm:$0xf]  ;;  %v2406_v22 = vld [vmem:[#allocation3 + $0x14] sm:$0xf] }
 0x3e4   :  { %v1184_v45 = vsel %vm138_vm9, %v1142_v23, %v1183_v50  ;;  %v2417_v12 = vld [vmem:[#allocation3 + $0x64] sm:$0xf0]  ;;  %v2289_v34 = vld [vmem:[#allocation3 + $0x68] sm:$0xf0] }
 0x3e5   :  { %1204 = vst.msk [vmem:[#allocation3 + $0x58] sm:$0xff] %vm2640_vm2, %v1184_v45  ;;  %v2288_v36 = vor.u32 %v2417_v12, %v2287_v0  ;;  %v2292_v63 = vor.u32 %v2416_v55, %v2289_v34  ;;  %v2410_v45 = vld [vmem:[#allocation3 + $0x34] sm:$0xf] }
 0x3e6   :  { %v1288_v1 = vpop.permute.xlu1 %1287  ;;  %v3254_v54 = vpop.permute.xlu2 %1279 }
 0x3e7   :  { %v1308_v40 = vrot.slane %v1288_v1, 4  ;;  %1584 = vmatpush.bf16.msrb.mxu1 %v2288_v36  ;;  %1610 = vmatpush.bf16.msrb.mxu0 %v2292_v63  ;;  %v1304_v1 = vrot.slane %v3254_v54, 4 }
 0x3e8   :  { %v1296_v44 = vpop.permute.xlu0 %1295 }
 0x3e9   :  { %v1323_v6 = vsel %vm98_vm0, %v1307_v2, %v1308_v40  ;;  %v1312_v49 = vrot.slane %v1296_v44, 4  ;;  %v2255_v44 = vld [vmem:[#allocation3 + $0x20] sm:$0xf] }
 0x3ea   :  { %v1324_v48 = vsel %vm208_vm6, %v1286_v14, %v1323_v6 }
 0x3eb   :  { %1342 = vst.msk [vmem:[#allocation3 + $0xa8] sm:$0xff] %vm2640_vm2, %v1324_v48  ;;  %v1327_v42 = vsel %vm98_vm0, %v1311_v58, %v1312_v49  ;;  %v2408_v58 = vld [vmem:[#allocation3 + $0x24] sm:$0xf] }
 0x3ec   :  { %v1328_v59 = vsel %vm208_vm6, %v1294_v11, %v1327_v42  ;;  %v2415_v43 = vld [vmem:[#allocation3 + $0x54] sm:$0xf0]  ;;  %v2281_v4 = vld [vmem:[#allocation3 + $0x58] sm:$0xf0] }
 0x3ed   :  { %1344 = vst.msk [vmem:[#allocation3 + $0xb8] sm:$0xff] %vm2640_vm2, %v1328_v59  ;;  %v2280_v35 = vor.u32 %v2415_v43, %v2279_v39  ;;  %v2284_v21 = vor.u32 %v2414_v19, %v2281_v4  ;;  %v1025_v43 = vrot.slane %v3215_v61, 4 }
 0x3ee   :  { %v1014_v38 = vpop.permute.xlu1 %1013  ;;  %v1006_v46 = vpop.permute.xlu2 %1005 }
 0x3ef   :  { %1585 = vmatpush.bf16.msrb.mxu1 %v2280_v35  ;;  %1611 = vmatpush.bf16.msrb.mxu0 %v2284_v21  ;;  %v1031_v37 = vrot.slane %v1006_v46, 4  ;;  %v1035_v7 = vrot.slane %v1014_v38, 4 }
 0x3f0   :  { %v1022_v32 = vpop.permute.xlu0 %1021 }
 0x3f1   :  { %v1039_v16 = vrot.slane %v1022_v32, 4 }
 0x3f2   :  { %v2425_v41 = vld [vmem:[#allocation3 + $0xa4] sm:$0xf0]  ;;  %v2321_v51 = vld [vmem:[#allocation3 + $0xa8] sm:$0xf0] }
 0x3f3   :  { %v1055_v20 = vsel %vm98_vm0, %v1039_v16, %v1040_v62  ;;  %1586 = vmatpush.bf16.msrb.mxu1 %v2272_v17  ;;  %1612 = vmatpush.bf16.msrb.mxu0 %v2276_v18  ;;  %v2320_v11 = vor.u32 %v2425_v41, %v2319_v8  ;;  %v2324_v14 = vor.u32 %v2424_v15, %v2321_v51  ;;  %v2311_v17 = vld [vmem:[#allocation3 + $0x90] sm:$0xf]  ;;  %v2303_v41 = vld [vmem:[#allocation3 + $0x80] sm:$0xf] }
 0x3f4   :  { %v1056_v26 = vsel %vm100_vm10, %v1022_v32, %v1055_v20  ;;  %v2427_v27 = vld [vmem:[#allocation3 + $0xb4] sm:$0xf0]  ;;  %v2329_v29 = vld [vmem:[#allocation3 + $0xb8] sm:$0xf0] }
 0x3f5   :  { %1072 = vst.msk [vmem:[#allocation3 + $0x38] sm:$0xff] %vm2640_vm2, %v1056_v26  ;;  %v2328_v30 = vor.u32 %v2427_v27, %v2327_v24  ;;  %v2332_v31 = vor.u32 %v2426_v28, %v2329_v29 }
 0x3f6   :  { %v1008_v33 = vpop.permute.xlu1 %1007  ;;  %v1000_v28 = vpop.permute.xlu2 %999 }
 0x3f7   :  { %v1032_v9 = vrot.slane %v1008_v33, 4  ;;  %1600 = vmatpush.bf16.msrb.mxu3 %v2328_v30  ;;  %1626 = vmatpush.bf16.msrb.mxu2 %v2332_v31  ;;  %v1028_v30 = vrot.slane %v1000_v28, 4 }
 0x3f8   :  { %v1016_v10 = vpop.permute.xlu0 %1015 }
 0x3f9   :  { %v1047_v3 = vsel %vm98_vm0, %v1031_v37, %v1032_v9  ;;  %v1036_v5 = vrot.slane %v1016_v10, 4  ;;  %v2420_v10 = vld [vmem:[#allocation3 + $0x84] sm:$0xf] }
 0x3fa   :  { %v1048_v23 = vsel %vm100_vm10, %v1006_v46, %v1047_v3  ;;  %v2422_v46 = vld [vmem:[#allocation3 + $0x94] sm:$0xf] }
 0x3fb   :  { %1068 = vst.msk [vmem:[#allocation3 + $0x18] sm:$0xff] %vm2640_vm2, %v1048_v23  ;;  %v1051_v47 = vsel %vm98_vm0, %v1035_v7, %v1036_v5  ;;  %1601 = vmatpush.bf16.msrb.mxu3 %v2320_v11  ;;  %1627 = vmatpush.bf16.msrb.mxu2 %v2324_v14 }
 0x3fc   :  { %v1052_v50 = vsel %vm100_vm10, %v1014_v38, %v1051_v47  ;;  %v2411_v0 = vld [vmem:[#allocation3 + $0x34] sm:$0xf0]  ;;  %v2265_v12 = vld [vmem:[#allocation3 + $0x38] sm:$0xf0]  ;;  %v2247_v38 = vld [vmem:[#allocation3 + $0x10] sm:$0xf] }
 0x3fd   :  { %1070 = vst.msk [vmem:[#allocation3 + $0x28] sm:$0xff] %vm2640_vm2, %v1052_v50  ;;  %v2264_v55 = vor.u32 %v2411_v0, %v2263_v53  ;;  %v2268_v34 = vor.u32 %v2410_v45, %v2265_v12 }
 0x3fe   :  { %v1270_v36 = vpop.permute.xlu1 %1269 }
 0x3ff   :  { %1587 = vmatpush.bf16.msrb.mxu1 %v2264_v55  ;;  %1613 = vmatpush.bf16.msrb.mxu0 %v2268_v34  ;;  %v1299_v21 = vrot.slane %v1270_v36, 4 }
 0x400   :  { %v1278_v63 = vpop.permute.xlu0 %1277 }
 0x401   :  { %v1303_v2 = vrot.slane %v1278_v63, 4 }
 0x402   :  { %v2407_v19 = vld [vmem:[#allocation3 + $0x14] sm:$0xf0]  ;;  %v2249_v4 = vld [vmem:[#allocation3 + $0x18] sm:$0xf0] }
 0x403   :  { %v1319_v40 = vsel %vm98_vm0, %v1303_v2, %v1304_v1  ;;  %v2248_v56 = vor.u32 %v2407_v19, %v2247_v38  ;;  %v2252_v52 = vor.u32 %v2406_v22, %v2249_v4 }
 0x404   :  { %v1320_v6 = vsel %vm208_vm6, %v1278_v63, %v1319_v40  ;;  %v2409_v49 = vld [vmem:[#allocation3 + $0x24] sm:$0xf0]  ;;  %v2257_v48 = vld [vmem:[#allocation3 + $0x28] sm:$0xf0] }
 0x405   :  { %1340 = vst.msk [vmem:[#allocation3 + $0x98] sm:$0xff] %vm2640_vm2, %v1320_v6  ;;  %v2256_v42 = vor.u32 %v2409_v49, %v2255_v44  ;;  %v2260_v39 = vor.u32 %v2408_v58, %v2257_v48 }
 0x406   :  { %v996_v59 = vpop.permute.xlu1 %995 }
 0x407   :  { %v1026_v54 = vrot.slane %v996_v59, 4  ;;  %1588 = vmatpush.bf16.msrb.mxu1 %v2256_v42  ;;  %1614 = vmatpush.bf16.msrb.mxu0 %v2260_v39 }
 0x408   :  { %v1272_v35 = vpop.permute.xlu0 %1271 }
 0x409   :  { %v1041_v25 = vsel %vm98_vm0, %v1025_v43, %v1026_v54  ;;  %v1300_v32 = vrot.slane %v1272_v35, 4 }
 0x40a   :  { %v1042_v62 = vsel %vm100_vm10, %v3215_v61, %v1041_v25  ;;  %v1377_v61 = vld [vmem:[%s3433_s5] sm:$0xff] }
 0x40b   :  { %1065 = vst.msk [vmem:[#allocation3] sm:$0xff] %vm2640_vm2, %v1042_v62  ;;  %v1315_v16 = vsel %vm98_vm0, %v1299_v21, %v1300_v32  ;;  %1589 = vmatpush.bf16.msrb.mxu1 %v2248_v56  ;;  %1615 = vmatpush.bf16.msrb.mxu0 %v2252_v52  ;;  %v1418_v33 = vunpack.c.h.b16 %v1377_v61  ;;  %v1417_v5 = vunpack.c.l.b16 %v1377_v61  ;;  %v1698_v52 = vld [vmem:[%s3438_s10 + $0x78] sm:$0xff]  ;;  %v1697_v62 = vld [vmem:[%s3438_s10 + $0x70] sm:$0xff]  ;;  %v1692_v61 = vld [vmem:[%s3438_s10 + $0x48] sm:$0xff] }
 0x40c   :  { %v1316_v18 = vsel %vm208_vm6, %v1270_v36, %v1315_v16  ;;  %v2423_v20 = vld [vmem:[#allocation3 + $0x94] sm:$0xf0]  ;;  %v2313_v24 = vld [vmem:[#allocation3 + $0x98] sm:$0xf0] }
 0x40d   :  { %1338 = vst.msk [vmem:[#allocation3 + $0x88] sm:$0xff] %vm2640_vm2, %v1316_v18  ;;  %v2312_v26 = vor.u32 %v2423_v20, %v2311_v17  ;;  %v2316_v27 = vor.u32 %v2422_v46, %v2313_v24  ;;  %v1420_v3 = vpack.c.b16 %v1418_v33, %v1418_v33  ;;  %v1419_v0 = vpack.c.b16 %v1417_v5, %v1417_v5  ;;  %v1696_v17 = vld [vmem:[%s3438_s10 + $0x68] sm:$0xff]  ;;  %v1707_v18 = vld [vmem:[%s3438_s10 + $0xc0] sm:$0xff]  ;;  %v1706_v20 = vld [vmem:[%s3438_s10 + $0xb8] sm:$0xff] }
 0x40e   :  { %v1414_v12 = vpop.permute.xlu1 %1413  ;;  %v1695_v46 = vld [vmem:[%s3438_s10 + $0x60] sm:$0xff]  ;;  %v1705_v24 = vld [vmem:[%s3438_s10 + $0xb0] sm:$0xff]  ;;  %v1690_v33 = vld [vmem:[%s3438_s10 + $0x38] sm:$0xff] }
 0x40f   :  { %1602 = vmatpush.bf16.msrb.mxu3 %v2312_v26  ;;  %1628 = vmatpush.bf16.msrb.mxu2 %v2316_v27  ;;  %v1694_v26 = vld [vmem:[%s3438_s10 + $0x58] sm:$0xff]  ;;  %v1693_v27 = vld [vmem:[%s3438_s10 + $0x50] sm:$0xff]  ;;  %v1704_v5 = vld [vmem:[%s3438_s10 + $0xa8] sm:$0xff] }
 0x410   :  { %v998_v29 = vpop.permute.xlu0 %997 }
 0x411   :  { %v1027_v31 = vrot.slane %v998_v29, 4 }
 0x412   :  { %v2239_v11 = vld [vmem:[#allocation3] sm:$0xf]  ;;  %v2404_v23 = vld [vmem:[#allocation3 + $0x4] sm:$0xf] }
 0x413   :  { %v1043_v37 = vsel %vm98_vm0, %v1027_v31, %v1028_v30  ;;  %v1691_v30 = vld [vmem:[%s3438_s10 + $0x40] sm:$0xff] }
 0x414   :  { %v1044_v51 = vsel %vm100_vm10, %v998_v29, %v1043_v37  ;;  %v2421_v9 = vld [vmem:[#allocation3 + $0x84] sm:$0xf0]  ;;  %v2305_v7 = vld [vmem:[#allocation3 + $0x88] sm:$0xf0] }
 0x415   :  { %1066 = vst.msk [vmem:[#allocation3 + $0x8] sm:$0xff] %vm2640_vm2, %v1044_v51  ;;  %v2304_v8 = vor.u32 %v2421_v9, %v2303_v41  ;;  %v2308_v15 = vor.u32 %v2420_v10, %v2305_v7  ;;  %v1689_v41 = vld [vmem:[%s3438_s10 + $0x30] sm:$0xff]  ;;  %v1664_v10 = vld [vmem:[%s3435_s7] sm:$0xff]  ;;  %s2506_s7 = smov 88  }
 0x417   :  { %1603 = vmatpush.bf16.msrb.mxu3 %v2304_v8  ;;  %1629 = vmatpush.bf16.msrb.mxu2 %v2308_v15  ;;  %v1673_v15 = vld [vmem:[%s3436_s8] sm:$0xff]  ;;  %s2509_s8 = smov 80  }
 0x41a   :  { %1604 = vmatmul.bf16.vlgmr.msrb.gmra.mxu3 %v1420_v3  ;;  %1630 = vmatmul.bf16.vlgmr.msrb.gmra.mxu2 %v1420_v3  ;;  %v1688_v3 = vld [vmem:[%s3438_s10 + $0x28] sm:$0xff] }
 0x41b   :  { %1738 = vmatpush.msra.mxu3 %v1707_v18 }
 0x41c   :  { %v2405_v14 = vld [vmem:[#allocation3 + $0x4] sm:$0xf0]  ;;  %v2241_v47 = vld [vmem:[#allocation3 + $0x8] sm:$0xf0] }
 0x41d   :  { %v2240_v53 = vor.u32 %v2405_v14, %v2239_v11  ;;  %v2244_v50 = vor.u32 %v2404_v23, %v2241_v47  ;;  %1739 = vmatpush.msra.mxu3 %v1706_v20  ;;  %v1687_v11 = vld [vmem:[%s3438_s10 + $0x20] sm:$0xff]  ;;  %v1686_v23 = vld [vmem:[%s3438_s10 + $0x18] sm:$0xff] }
 0x41e   :  { %v1703_v14 = vld [vmem:[%s3438_s10 + $0xa0] sm:$0xff]  ;;  %v1702_v47 = vld [vmem:[%s3438_s10 + $0x98] sm:$0xff] }
 0x41f   :  { %1590 = vmatpush.bf16.msrb.mxu1 %v2240_v53  ;;  %1616 = vmatpush.bf16.msrb.mxu0 %v2244_v50  ;;  %v1685_v53 = vld [vmem:[%s3438_s10 + $0x10] sm:$0xff] }
 0x420   :  { %1740 = vmatpush.msra.mxu3 %v1705_v24  ;;  %v1701_v50 = vld [vmem:[%s3438_s10 + $0x90] sm:$0xff] }
 0x422   :  { %1591 = vmatmul.bf16.vlgmr.msrb.gmra.mxu1 %v1419_v0  ;;  %1617 = vmatmul.bf16.vlgmr.msrb.gmra.mxu0 %v1419_v0  ;;  %v1684_v0 = vld [vmem:[%s3438_s10 + $0x8] sm:$0xff] }
 0x423   :  { %1711 = vmatpush.msra.mxu1 %v1698_v52  ;;  %1741 = vmatpush.msra.mxu3 %v1704_v5 }
 0x425   :  { %1712 = vmatpush.msra.mxu1 %v1697_v62  ;;  %1742 = vmatpush.msra.mxu3 %v1703_v14 }
 0x427   :  { %1713 = vmatpush.msra.mxu1 %v1696_v17  ;;  %1743 = vmatpush.msra.mxu3 %v1702_v47 }
 0x429   :  { %1714 = vmatpush.msra.mxu1 %v1695_v46  ;;  %1744 = vmatpush.msra.mxu3 %v1701_v50 }
 0x42b   :  { %1715 = vmatpush.msra.mxu1 %v1694_v26 }
 0x42d   :  { %1716 = vmatpush.msra.mxu1 %v1693_v27 }
 0x42f   :  { %1717 = vmatpush.msra.mxu1 %v1692_v61 }
 0x431   :  { %1718 = vmatpush.msra.mxu1 %v1691_v30 }
 0x433   :  { %1719 = vmatpush.msra.mxu1 %v1690_v33 }
 0x435   :  { %1720 = vmatpush.msra.mxu1 %v1689_v41 }
 0x437   :  { %1721 = vmatpush.msra.mxu1 %v1688_v3 }
 0x439   :  { %1722 = vmatpush.msra.mxu1 %v1687_v11 }
 0x43b   :  { %1723 = vmatpush.msra.mxu1 %v1686_v23 }
 0x43d   :  { %1724 = vmatpush.msra.mxu1 %v1685_v53 }
 0x43f   :  { %1725 = vmatpush.msra.mxu1 %v1684_v0 }
 0x49d   :  { %v1605_v13 = vpop.f32.mrf.mxu3  ;;  %v1631_v45 = vpop.f32.mrf.mxu2 }
 0x49f   :  { %v1592_v55 = vpop.f32.mrf.mxu1  ;;  %v1618_v34 = vpop.f32.mrf.mxu0 }
 0x4a0   :  { %v1593_v36 = vadd.f32 %v1592_v55, %v1414_v12  ;;  %v1619_v63 = vadd.f32 %v1618_v34, %v1414_v12  ;;  %v1699_v12 = vld [vmem:[%s3438_s10 + $0x80] sm:$0xff] }
 0x4a1   :  { %v1759_v55 = vld [vmem:[%s3439_s11] sm:$0xf]  ;;  %s2505_s11 = smov 72  }
 0x4a2   :  { %v1606_v1 = vadd.f32 %v1605_v13, %v1593_v36  ;;  %v1632_v2 = vadd.f32 %v1631_v45, %v1619_v63  ;;  %v1700_v13 = vld [vmem:[%s3438_s10 + $0x88] sm:$0xff]  ;;  %v1683_v45 = vld [vmem:[%s3438_s10] sm:$0xff]  ;;  %s2503_s10 = smov 104  }
 0x4a3   :  { %1745 = vmatpush.msra.mxu3 %v1700_v13  ;;  %1726 = vmatpush.msra.mxu1 %v1683_v45 }
 0x4a4   :  { %v1635_v40 = vmul.f32 %v1606_v1, %v2815_v57  ;;  %v1636_v44 = vmul.f32 %v1632_v2, %v2817_v60 }
 0x4a5   :  { %v1607_v6 = vpop.f32.mrf.mxu3  ;;  %v1633_v49 = vpop.f32.mrf.mxu2  ;;  %1746 = vmatpush.msra.mxu3 %v1699_v12 }
 0x4a6   :  { %v1637_v58 = vsel %vm658_vm12, %v1636_v44, 0.0 }
 0x4a7   :  { %v1594_v48 = vpop.f32.mrf.mxu1  ;;  %v1620_v42 = vpop.f32.mrf.mxu0  ;;  %v1638_v39 = vadd.f32 %v1637_v58, %v1635_v40 }
 0x4a9   :  { %1639 = vadd.xlane.f32.xlu0 %v1638_v39 }
 0x4bd   :  { %1843 = vrot.lane.b32.xlu0 %v1759_v55, %s2503_s10 }
 0x4c5   :  { %1955 = vrot.lane.b32.xlu0 %v1759_v55, %s2505_s11 }
 0x51c   :  { %v1640_v59 = vpop.xlane.xlu0 %1639 }
 0x51d   :  { %v1641_v43 = vmul.f32 0.0078125, %v1640_v59 }
 0x51f   :  { %v3300_v19 = vsub.f32 %v1606_v1, %v1641_v43  ;;  %v3302_v4 = vsub.f32 %v1632_v2, %v1641_v43 }
 0x521   :  { %v1645_v54 = vmul.f32 %v3302_v4, %v2817_v60  ;;  %v1644_v35 = vmul.f32 %v3300_v19, %v2815_v57 }
 0x523   :  { %v1646_v21 = vmul.f32 %v1644_v35, %v1644_v35  ;;  %v1647_v38 = vmul.f32 %v1645_v54, %v1645_v54 }
 0x525   :  { %v1648_v22 = vsel %vm658_vm12, %v1647_v38, 0.0 }
 0x526   :  { %v1649_v25 = vadd.f32 %v1648_v22, %v1646_v21 }
 0x528   :  { %1650 = vadd.xlane.f32.xlu2 %v1649_v25 }
 0x52f   :  { %v1844_v43 = vpop.permute.xlu0 %1843 }
 0x59b   :  { %v1651_v32 = vpop.xlane.xlu2 %1650 }
 0x59c   :  { %v1652_v56 = vmul.f32 0.0078125, %v1651_v32 }
 0x59e   :  { %v1653_v16 = vadd.f32 1e-05, %v1652_v56 }
 0x5a0   :  { %2462 = vrsqrt.f32 %v1653_v16  ;;  %vm1660_vm5 = vweird.f32 %v1653_v16 }
 0x5a6   :  { %v2463_v28 = vpop.eup %2462 }
 0x5a7   :  { %v1655_v29 = vmul.f32 %v2463_v28, %v1653_v16  ;;  %vm1661_vm2 = vweird.f32 %v2463_v28 }
 0x5a8   :  { %vm1662_vm6 = vmor %vm1660_vm5, %vm1661_vm2 }
 0x5a9   :  { %v1656_v31 = vmul.f32 %v2463_v28, %v1655_v29 }
 0x5ab   :  { %v1657_v37 = vmul.f32 0.5, %v1656_v31 }
 0x5ad   :  { %v1658_v51 = vsub.f32 1.5, %v1657_v37 }
 0x5af   :  { %v1659_v9 = vmul.f32 %v2463_v28, %v1658_v51 }
 0x5b1   :  { %v1663_v7 = vsel %vm1662_vm6, %v2463_v28, %v1659_v9 }
 0x5b2   :  { %v1665_v8 = vmul.f32 %v1664_v10, %v1663_v7 }
 0x5b4   :  { %1668 = vperm.xlu1 %2456, %v1665_v8  }
 0x5bc   :  { %1676 = vperm.xlu1 %2456, %v1673_v15  }
 0x5c4   :  { %1786 = vrot.lane.b32.xlu1 %v1759_v55, %s2502_s27 }
 0x5cc   :  { %1815 = vrot.lane.b32.xlu1 %v1759_v55, %s2504_s9 }
 0x5d4   :  { %1899 = vrot.lane.b32.xlu1 %v1759_v55, %s2506_s7 }
 0x626   :  { %v1669_v34 = vpop.permute.xlu1 %1668 }
 0x627   :  { %v1671_v36 = vmul.f32 %v1669_v34, %v3300_v19  ;;  %v1672_v63 = vmul.f32 %v1669_v34, %v3302_v4  ;;  %v1956_v4 = vpop.permute.xlu0 %1955 }
 0x62e   :  { %v1677_v1 = vpop.permute.xlu1 %1676 }
 0x62f   :  { %v1679_v2 = vadd.f32 %v1677_v1, %v1671_v36  ;;  %v1680_v40 = vadd.f32 %v1677_v1, %v1672_v63  ;;  %v2041_v63 = vld [vmem:[%s3442_s14] sm:$0xf]  ;;  %v2073_v1 = vld [vmem:[#allocation5] sm:$0x1]  ;;  %s2510_s14 = smov [#allocation6]  }
 0x630   :  { %s2114_s22 = sshll.u32 %s2510_s14, 4  ;;  %s2115_s22 = int_to_ptr.vmem [resolvable:$true] %s2114_s22 }
 0x631   :  { %v1681_v44 = vmul.f32 %v1679_v2, %v2815_v57  ;;  %v1682_v6 = vmul.f32 %v1680_v40, %v2817_v60  ;;  %v1752_v57 = vld [vmem:[%s3440_s12] sm:$0xf] }
 0x632   :  { %v2048_v2 = vld [vmem:[%s3443_s15] sm:$0xff] }
 0x633   :  { %1727 = vmatmul.f32.vlgmr.msra.gmra.mxu1 %v1681_v44  ;;  %2365 = vmatmul.msk.f32.vlgmr.msra.gmra.mxu3 %vm658_vm12, %v1682_v6 }
 0x636   :  { %v1787_v60 = vpop.permute.xlu1 %1786 }
 0x63e   :  { %v1816_v39 = vpop.permute.xlu1 %1815 }
 0x646   :  { %v1900_v54 = vpop.permute.xlu1 %1899 }
 0x6b0   :  { %v1728_v49 = vpop.f32.mrf.mxu1 }
 0x6b6   :  { %v1748_v58 = vpop.f32.mrf.mxu3 }
 0x6b7   :  { %v1749_v48 = vadd.f32 %v1748_v58, %v1728_v49  ;;  %v2072_v58 = vld [vmem:[%s3444_s16] sm:$0x1] }
 0x6b9   :  { %1751 = vst.msk [vmem:[#allocation4] sm:$0xff] %vm658_vm12, %v1749_v48  ;;  %vm2080_vm12 = vcmask 31744  }
 0x6c0   :  { %v1760_v42 = vld [vmem:[#allocation4] sm:$0xff] }
 0x6c1   :  { %1873 = vrot.lane.b32.xlu0 %v1760_v42, %s2507_s25  ;;  %1817 = vrot.lane.b32.xlu2 %v1760_v42, %s2504_s9 }
 0x6c2   :  { %1789 = vrot.lane.b32.xlu1 %v1760_v42, %s2502_s27  ;;  %1780 = vmatpush.msrb.mxu3 %v1760_v42 }
 0x6c3   :  { %2366 = vmatmul.msk.f32.vlgmr.msrb.gmra.mxu3 %vm1761_vm7, %v1759_v55 }
 0x6c9   :  { %1985 = vrot.lane.b32.xlu0 %v1760_v42, %s2508_s4  ;;  %1957 = vrot.lane.b32.xlu2 %v1760_v42, %s2505_s11 }
 0x6ca   :  { %1845 = vrot.lane.b32.xlu1 %v1760_v42, %s2503_s10 }
 0x6d1   :  { %1929 = vrot.lane.b32.xlu2 %v1760_v42, %s2509_s8 }
 0x6d2   :  { %1901 = vrot.lane.b32.xlu1 %v1760_v42, %s2506_s7 }
 0x6d9   :  { %1983 = vrot.lane.b32.xlu2 %v1759_v55, %s2508_s4 }
 0x6da   :  { %1871 = vrot.lane.b32.xlu1 %v1759_v55, %s2507_s25 }
 0x6e2   :  { %1927 = vrot.lane.b32.xlu1 %v1759_v55, %s2509_s8  ;;  %v2033_v55 = vld [vmem:[%s3441_s13] sm:$0xf] }
 0x6ea   :  { %1755 = vperm.xlu1 %2456, %v1752_v57  }
 0x71b   :  { %v1818_v59 = vpop.permute.xlu2 %1817 }
 0x71c   :  { %1837 = vmatpush.msrb.mxu1 %v1818_v59 }
 0x71d   :  { %2368 = vmatmul.msk.f32.vlgmr.msrb.gmra.mxu1 %vm1761_vm7, %v1816_v39 }
 0x723   :  { %v1958_v19 = vpop.permute.xlu2 %1957 }
 0x72b   :  { %v1930_v35 = vpop.permute.xlu2 %1929 }
 0x72c   :  { %1949 = vmatpush.msra.mxu1 %v1930_v35 }
 0x733   :  { %v1874_v21 = vpop.permute.xlu0 %1873  ;;  %v1984_v52 = vpop.permute.xlu2 %1983 }
 0x734   :  { %v1790_v38 = vpop.permute.xlu1 %1789  ;;  %1893 = vmatpush.msra.mxu0 %v1874_v21 }
 0x735   :  { %1809 = vmatpush.msra.mxu3 %v1790_v38 }
 0x736   :  { %2367 = vmatmul.msk.f32.vlgmr.msra.gmra.mxu3 %vm1761_vm7, %v1787_v60 }
 0x73b   :  { %v1986_v22 = vpop.permute.xlu0 %1985 }
 0x73c   :  { %v1846_v25 = vpop.permute.xlu1 %1845  ;;  %2005 = vmatpush.msrb.mxu0 %v1986_v22 }
 0x73d   :  { %1865 = vmatpush.msrb.mxu3 %v1846_v25 }
 0x73e   :  { %2369 = vmatmul.msk.f32.vlgmr.msrb.gmra.mxu3 %vm1761_vm7, %v1844_v43 }
 0x73f   :  { %1977 = vmatpush.msra.mxu3 %v1958_v19 }
 0x744   :  { %v1902_v32 = vpop.permute.xlu1 %1901 }
 0x745   :  { %1921 = vmatpush.msra.mxu2 %v1902_v32 }
 0x746   :  { %2371 = vmatmul.msk.f32.vlgmr.msra.gmra.mxu2 %vm1761_vm7, %v1900_v54  ;;  %2373 = vmatmul.msk.f32.vlgmr.msra.gmra.mxu3 %vm1761_vm7, %v1956_v4  ;;  %v1782_v16 = vpop.f32.mrf.mxu3 }
 0x747   :  { %2067 = vmatpush.msrb.mxu2 %v2048_v2 }
 0x74c   :  { %v1872_v56 = vpop.permute.xlu1 %1871 }
 0x74d   :  { %2370 = vmatmul.msk.f32.vlgmr.msra.gmra.mxu0 %vm1761_vm7, %v1872_v56 }
 0x754   :  { %v1928_v62 = vpop.permute.xlu1 %1927 }
 0x755   :  { %2372 = vmatmul.msk.f32.vlgmr.msra.gmra.mxu1 %vm1761_vm7, %v1928_v62  ;;  %2374 = vmatmul.msk.f32.vlgmr.msrb.gmra.mxu0 %vm1761_vm7, %v1984_v52 }
 0x75c   :  { %v1756_v18 = vpop.permute.xlu1 %1755 }
 0x75d   :  { %v1785_v20 = vadd.f32 %v1782_v16, %v1756_v18 }
 0x79a   :  { %v1839_v24 = vpop.f32.mrf.mxu1 }
 0x7b9   :  { %v1811_v17 = vpop.f32.mrf.mxu3 }
 0x7ba   :  { %v1814_v46 = vadd.f32 %v1811_v17, %v1785_v20 }
 0x7bc   :  { %v1842_v27 = vadd.f32 %v1839_v24, %v1814_v46 }
 0x7c1   :  { %v1867_v26 = vpop.f32.mrf.mxu3 }
 0x7c2   :  { %v1870_v61 = vadd.f32 %v1867_v26, %v1842_v27 }
 0x7c9   :  { %v1923_v30 = vpop.f32.mrf.mxu2  ;;  %v1979_v41 = vpop.f32.mrf.mxu3 }
 0x7ca   :  { %v1895_v28 = vpop.f32.mrf.mxu0 }
 0x7cb   :  { %v1898_v29 = vadd.f32 %v1895_v28, %v1870_v61 }
 0x7cd   :  { %v1926_v31 = vadd.f32 %v1923_v30, %v1898_v29 }
 0x7d2   :  { %v1951_v33 = vpop.f32.mrf.mxu1  ;;  %v2007_v51 = vpop.f32.mrf.mxu0 }
 0x7d3   :  { %v1954_v37 = vadd.f32 %v1951_v33, %v1926_v31 }
 0x7d5   :  { %v1982_v9 = vadd.f32 %v1979_v41, %v1954_v37 }
 0x7d7   :  { %v2010_v10 = vadd.f32 %v2007_v51, %v1982_v9 }
 0x7d9   :  { %v2012_v7 = vsel %vm2011_vm8, %v2010_v10, 0.0 }
 0x7da   :  { %2013 = vadd.xlane.f32.xlu0 %v2012_v7 }
 0x84d   :  { %v2014_v8 = vpop.xlane.xlu0 %2013 }
 0x84e   :  { %v2015_v15 = vmul.f32 0.125, %v2014_v8 }
 0x850   :  { %v2016_v3 = vsub.f32 %v2010_v10, %v2015_v15 }
 0x852   :  { %v2017_v5 = vmul.f32 %v2016_v3, %v2016_v3 }
 0x854   :  { %v2018_v11 = vsel %vm2011_vm8, %v2017_v5, 0.0 }
 0x855   :  { %2019 = vadd.xlane.f32.xlu2 %v2018_v11 }
 0x8c8   :  { %v2020_v14 = vpop.xlane.xlu2 %2019 }
 0x8c9   :  { %v2021_v23 = vmul.f32 0.125, %v2020_v14 }
 0x8cb   :  { %v2022_v47 = vadd.f32 1e-05, %v2021_v23 }
 0x8cd   :  { %2464 = vrsqrt.f32 %v2022_v47  ;;  %vm2029_vm10 = vweird.f32 %v2022_v47 }
 0x8d3   :  { %v2465_v53 = vpop.eup %2464 }
 0x8d4   :  { %v2024_v50 = vmul.f32 %v2465_v53, %v2022_v47  ;;  %vm2030_vm9 = vweird.f32 %v2465_v53 }
 0x8d5   :  { %vm2031_vm11 = vmor %vm2029_vm10, %vm2030_vm9 }
 0x8d6   :  { %v2025_v0 = vmul.f32 %v2465_v53, %v2024_v50 }
 0x8d8   :  { %v2026_v13 = vmul.f32 0.5, %v2025_v0 }
 0x8da   :  { %v2027_v45 = vsub.f32 1.5, %v2026_v13 }
 0x8dc   :  { %v2028_v12 = vmul.f32 %v2465_v53, %v2027_v45 }
 0x8de   :  { %v2032_v34 = vsel %vm2031_vm11, %v2465_v53, %v2028_v12 }
 0x8df   :  { %v2034_v36 = vmul.f32 %v2033_v55, %v2032_v34 }
 0x8e1   :  { %2037 = vperm.xlu1 %2456, %v2034_v36  }
 0x8e9   :  { %2044 = vperm.xlu1 %2456, %v2041_v63  }
 0x8f1   :  { %2076 = vperm.xlu1 %2456, %v2073_v1  }
 0x953   :  { %v2038_v40 = vpop.permute.xlu1 %2037 }
 0x954   :  { %v2040_v44 = vmul.f32 %v2038_v40, %v2016_v3 }
 0x95b   :  { %v2045_v6 = vpop.permute.xlu1 %2044 }
 0x95c   :  { %v2047_v49 = vadd.f32 %v2045_v6, %v2040_v44 }
 0x95e   :  { %2375 = vmatmul.msk.f32.vlgmr.msrb.gmra.mxu2 %vm1761_vm7, %v2047_v49 }
 0x963   :  { %v2077_v42 = vpop.permute.xlu1 %2076 }
 0x964   :  { %v2079_v57 = vperm.slane %v2077_v42, 0 }
 0x9e1   :  { %v2069_v48 = vpop.f32.mrf.mxu2 }
 0x9e2   :  { %2376 = vmatpush.msk.msrb.mxu1 %vm98_vm0, %v2069_v48 }
 0x9e3   :  { %2377 = vmatmul.msk.f32.vlgmr.msrb.gmra.mxu1 %vm2080_vm12, %v2072_v58 }
 0xa60   :  { %v2104_v60 = vpop.f32.mrf.mxu1 }
 0xa61   :  { %v2105_v39 = vadd.f32 %v2104_v60, %v2079_v57 }
 0xa63   :  { %2108 = vst.msk [vmem:[#allocation6] sm:$0x1] %vm2107_vm13, %v2105_v39 }
 0xa64   :  { %2119 = dma.vmem_to_hbm [thread:$0]  %s2115_s22, 16, %s2117_s20, [#allocation7]  }
 0xa65   :  { %2490 = dma.done.wait [#allocation7], 16  }
 0xa66   :  { %2491 = vsyncadd [#allocation7], 4294967280 }
 0xa67   :  { %2124 = vsyncpa [#allocation7], 1 }

</bundles_post_ra>
